<compile_context>
chip_gen: v7x
topology: tpu7x:2x2x1
jax: 0.10.0
libtpu: 0.0.40
codegen_flags: <defaults>
</compile_context>

<pallas_src>
import functools

import jax
import jax.numpy as jnp
from jax import lax
from jax.experimental import pallas as pl
from jax.experimental.pallas import tpu as pltpu


def _round_up(x, m):
    return ((x + m - 1) // m) * m


# ---------------------------------------------------------------------------
# Pallas kernel: one output tile = k*k shifted MXU matmuls accumulated in f32,
# + fused (pre-folded BN) bias + fused activation.  Epilogue stays in f32.
# ---------------------------------------------------------------------------
def _conv_tile_kernel(x_ref, w_ref, b_ref, o_ref, *, k, activation):
    # x_ref: (1, rows_out + k - 1, wout + k - 1, cin)  bf16 input band (halo incl.)
    # w_ref: (k*k, cin, tn)                            bf16 weight tile
    # b_ref: (1, tn)                                   f32 folded bias
    # o_ref: (1, rows_out, wout, tn)
    _, rows_out, wout, tn = o_ref.shape
    cin = x_ref.shape[-1]

    acc = jnp.zeros((rows_out * wout, tn), jnp.float32)
    for dy in range(k):                       # unrolled: k*k MXU matmuls
        for dx in range(k):
            a = x_ref[0, dy:dy + rows_out, dx:dx + wout, :]
            a = a.reshape(rows_out * wout, cin)
            acc = acc + jnp.dot(a, w_ref[dy * k + dx],
                                preferred_element_type=jnp.float32)
    acc = acc + b_ref[...]
    if activation == "relu":
        acc = jnp.maximum(acc, 0.0)
    elif activation == "silu":
        # exp and the reciprocal both land on the EUP slot (free vs the VALU).
        acc = acc * pl.reciprocal(1.0 + jnp.exp(-acc), approx=True)
    elif callable(activation):
        acc = activation(acc)
    o_ref[...] = acc.reshape(1, rows_out, wout, tn).astype(o_ref.dtype)


# ---------------------------------------------------------------------------
# Chip-aware VMEM budget + tile selection
# ---------------------------------------------------------------------------
def _vmem_budget():
    """(per-step tile budget, vmem_limit_bytes) — chip dependent."""
    cap = None
    try:
        cap = getattr(pltpu.get_tpu_info(), "vmem_capacity_bytes", None)
    except Exception:
        cap = None
    if cap is None:
        cap = 64 * 1024 * 1024                      # conservative (v7x-sized)
    if cap >= 100 * 1024 * 1024:                    # 128 MiB parts (v5e / v6e)
        return 56 * 1024 * 1024, 96 * 1024 * 1024
    return 24 * 1024 * 1024, 48 * 1024 * 1024       # v7x (64 MiB physical)


def _pick_tiles(n, hout, wout, cin, k, coutp, out_bytes, budget):
    """Choose (output-rows-per-tile, cout tile) under the VMEM budget while
    keeping >= 4 grid tiles so both v7x TensorCores get work."""
    tn = coutp
    for cand in (512, 256):                         # cap resident weight/output width
        if coutp > cand and coutp % cand == 0:
            tn = cand
            break
    if tn > 512:                                    # huge Cout not divisible by 256/512
        tn = 128

    wp = wout + k - 1

    def need(tm, tn):
        rows_in = tm + k - 1
        band = rows_in * wp * cin * 2               # bf16 input band
        wblk = k * k * cin * tn * 2                 # bf16 weight tile
        outb = tm * wout * tn * out_bytes           # output tile
        acc = tm * wout * tn * 4                    # f32 accumulator value
        slc = band                                  # sliced-operand copy headroom
        return 2 * (band + wblk + outb) + acc + slc + 2 * tn * 4

    tm = max(1, min(hout, pl.cdiv(1024, wout)))     # ~1024 output pixels per tile
    while tm > 1 and need(tm, tn) > budget:
        tm = pl.cdiv(tm, 2)
    while tn > 128 and need(tm, tn) > budget:       # deep layers: bound the weight tile
        nxt = tn // 2
        tn = nxt if (nxt % 128 == 0 and coutp % nxt == 0) else 128
    while tm > 1 and n * pl.cdiv(hout, tm) * (coutp // tn) < 4:
        tm = pl.cdiv(tm, 2)                         # keep the v7x megacore fed
    return tm, tn


# ---------------------------------------------------------------------------
# BaseConv forward
# ---------------------------------------------------------------------------
def base_conv_forward(x, weight, bias, *, kernel, stride=1,
                      use_bn=False, bn_gamma=None, bn_beta=None,
                      bn_mean=None, bn_var=None, bn_eps=1e-5,
                      activation=None, out_layout="NCHW", out_dtype=None):
    """x: (N, Cin, H, W). weight: (Cout, Cin, k, k). bias: (Cout,).

    Matches BaseConv.forward: Conv2d(padding=kernel//2) -> [BN] -> [activation].
    `activation` may be None, "relu", "silu", or a JAX-traceable callable.
    For chained convs prefer out_layout="NHWC" and out_dtype=jnp.bfloat16 to skip
    the layout transpose and halve the output HBM stream.
    """
    if activation not in (None, "relu", "silu") and not callable(activation):
        raise ValueError(f"unsupported activation: {activation!r}")

    n, cin, h, w = x.shape
    cout = weight.shape[0]
    pad = kernel // 2                               # == nn.Conv2d(..., padding=kernel // 2)
    out_dtype = jnp.dtype(x.dtype if out_dtype is None else out_dtype)

    # ---- fold eval-mode BatchNorm into the conv weight / bias (f32) ---------
    w_f = weight.astype(jnp.float32)
    b_f = bias.astype(jnp.float32)
    if use_bn:
        scale = bn_gamma / jnp.sqrt(bn_var + bn_eps)
        shift = bn_beta - bn_mean * scale
        w_f = w_f * scale[:, None, None, None]
        b_f = b_f * scale + shift

    x_nhwc = jnp.transpose(x, (0, 2, 3, 1)).astype(jnp.bfloat16)

    if stride == 1:
        # Direct path: no materialized im2col, input stream stays ~1x raw input.
        k_eff, cin_eff = kernel, cin
        hout = h + 2 * pad - kernel + 1
        wout = w + 2 * pad - kernel + 1
        x_eff = jnp.pad(x_nhwc, ((0, 0), (pad, pad), (pad, pad), (0, 0)))
        w_eff = jnp.transpose(w_f, (2, 3, 1, 0)).reshape(kernel * kernel, cin, cout)
    else:
        # Fallback: patches front-end feeding the same kernel as a 1x1 conv.
        patches = lax.conv_general_dilated_patches(
            x_nhwc, filter_shape=(kernel, kernel),
            window_strides=(stride, stride),
            padding=[(pad, pad), (pad, pad)],
            dimension_numbers=("NHWC", "HWIO", "NHWC"))
        _, hout, wout, cin_eff = patches.shape      # feature order = (c, kh, kw)
        k_eff = 1
        x_eff = patches
        w_eff = w_f.reshape(cout, cin_eff).T.reshape(1, cin_eff, cout)

    # ---- lane-dense Cout padding, bf16 weights, f32 bias row ----------------
    coutp = _round_up(cout, 128)
    if coutp != cout:
        w_eff = jnp.pad(w_eff, ((0, 0), (0, 0), (0, coutp - cout)))
        b_f = jnp.pad(b_f, (0, coutp - cout))
    w_eff = w_eff.astype(jnp.bfloat16)
    b_row = b_f.reshape(1, coutp)

    # ---- tiling --------------------------------------------------------------
    budget, vmem_limit = _vmem_budget()
    out_bytes = out_dtype.itemsize
    tm, tn = _pick_tiles(n, hout, wout, cin_eff, k_eff, coutp, out_bytes, budget)

    wp = x_eff.shape[2]
    n_rt = pl.cdiv(hout, tm)
    rows_in = tm + k_eff - 1
    rows_needed = n_rt * tm + k_eff - 1
    if rows_needed > x_eff.shape[1]:
        x_eff = jnp.pad(x_eff, ((0, 0), (0, rows_needed - x_eff.shape[1]),
                                (0, 0), (0, 0)))
    if n_rt == 1:
        bands = x_eff[:, :rows_in]
    else:
        idx = (jnp.arange(n_rt) * tm)[:, None] + jnp.arange(rows_in)[None, :]
        bands = x_eff[:, idx].reshape(n * n_rt, rows_in, wp, cin_eff)

    cost = pl.CostEstimate(
        flops=2 * n * hout * wout * (k_eff * k_eff * cin_eff) * coutp,
        transcendentals=n * hout * wout * coutp if activation == "silu" else 0,
        bytes_accessed=(n * n_rt * rows_in * wp * cin_eff * 2
                        + k_eff * k_eff * cin_eff * coutp * 2 + coutp * 4
                        + n * n_rt * tm * wout * coutp * out_bytes))

    out = pl.pallas_call(
        functools.partial(_conv_tile_kernel, k=k_eff, activation=activation),
        out_shape=jax.ShapeDtypeStruct((n * n_rt, tm, wout, coutp), out_dtype),
        grid_spec=pltpu.PrefetchScalarGridSpec(
            num_scalar_prefetch=0,
            grid=(coutp // tn, n * n_rt),           # cout tiles outer -> weight read once
            in_specs=[
                pl.BlockSpec((1, rows_in, wp, cin_eff), lambda j, t: (t, 0, 0, 0)),
                pl.BlockSpec((k_eff * k_eff, cin_eff, tn), lambda j, t: (0, 0, j)),
                pl.BlockSpec((1, tn), lambda j, t: (0, j)),
            ],
            out_specs=pl.BlockSpec((1, tm, wout, tn), lambda j, t: (t, 0, 0, j)),
        ),
        compiler_params=pltpu.CompilerParams(
            dimension_semantics=("parallel", "parallel"),
            vmem_limit_bytes=vmem_limit),
        cost_estimate=cost,
    )(bands, w_eff, b_row)

    y = out.reshape(n, n_rt * tm, wout, coutp)
    if n_rt * tm != hout:
        y = y[:, :hout]
    if coutp != cout:
        y = y[..., :cout]
    if out_layout == "NHWC":                        # skip transpose if caller takes NHWC
        return y
    return jnp.transpose(y, (0, 3, 1, 2))


# ---------------------------------------------------------------------------
# Deterministic parameter init mirroring BaseConv.__init__
# ---------------------------------------------------------------------------
def init_base_conv_params(key, in_channels, out_channels, kernel):
    # conv.weight ~ N(0, 0.01), conv.bias = 0; fresh BN: gamma=1, beta=0, mean=0, var=1
    weight = 0.01 * jax.random.normal(
        key, (out_channels, in_channels, kernel, kernel), jnp.float32)
    bias = jnp.zeros((out_channels,), jnp.float32)
    bn_gamma = jnp.ones((out_channels,), jnp.float32)
    bn_beta = jnp.zeros((out_channels,), jnp.float32)
    bn_mean = jnp.zeros((out_channels,), jnp.float32)
    bn_var = jnp.ones((out_channels,), jnp.float32)
    return weight, bias, bn_gamma, bn_beta, bn_mean, bn_var


if __name__ == "__main__":
    key = jax.random.PRNGKey(0)
    k_x, k_w = jax.random.split(key)

    N, CIN, H, W = 2, 4, 16, 16
    COUT, KERNEL = 8, 3

    x = jax.random.normal(k_x, (N, CIN, H, W), jnp.float32)
    weight, bias, bn_g, bn_b, bn_m, bn_v = init_base_conv_params(
        k_w, CIN, COUT, KERNEL)

    # References use the same bf16 rounding as the MXU operands.
    x_bf = x.astype(jnp.bfloat16).astype(jnp.float32)
    w_bf = weight.astype(jnp.bfloat16).astype(jnp.float32)
    pad = KERNEL // 2

    # ---- default module config: conv only (stride=1, no BN, no activation) ---
    y = base_conv_forward(x, weight, bias, kernel=KERNEL, stride=1,
                          use_bn=False, activation=None)
    jax.block_until_ready(y)
    assert y.shape == (N, COUT, H, W), y.shape
    y_ref = lax.conv_general_dilated(
        x_bf, w_bf, window_strides=(1, 1), padding=[(pad, pad)] * 2,
        dimension_numbers=("NCHW", "OIHW", "NCHW"),
        preferred_element_type=jnp.float32) + bias.reshape(1, -1, 1, 1)
    err = float(jnp.max(jnp.abs(y - y_ref)))
    assert jnp.allclose(y, y_ref, atol=2e-3, rtol=2e-2), err

    # ---- BN + SiLU config (folded-BN + fused-activation path) ----------------
    y2 = base_conv_forward(x, weight, bias, kernel=KERNEL, stride=1,
                           use_bn=True, bn_gamma=bn_g, bn_beta=bn_b,
                           bn_mean=bn_m, bn_var=bn_v, activation="silu")
    jax.block_until_ready(y2)
    scale = bn_g / jnp.sqrt(bn_v + 1e-5)
    shift = bn_b - bn_m * scale
    w_folded = (weight.reshape(COUT, -1) * scale[:, None])
    w_folded = w_folded.astype(jnp.bfloat16).astype(jnp.float32)
    w_folded = w_folded.reshape(COUT, CIN, KERNEL, KERNEL)
    y2_ref = lax.conv_general_dilated(
        x_bf, w_folded, window_strides=(1, 1), padding=[(pad, pad)] * 2,
        dimension_numbers=("NCHW", "OIHW", "NCHW"),
        preferred_element_type=jnp.float32)
    y2_ref = y2_ref + (bias * scale + shift).reshape(1, -1, 1, 1)
    y2_ref = y2_ref * (1.0 / (1.0 + jnp.exp(-y2_ref)))
    err2 = float(jnp.max(jnp.abs(y2 - y2_ref)))
    assert jnp.allclose(y2, y2_ref, atol=2e-3, rtol=2e-2), err2

    # ---- stride=2 + ReLU (patches fallback feeding the same Pallas kernel) ---
    y3 = base_conv_forward(x, weight, bias, kernel=KERNEL, stride=2,
                           use_bn=False, activation="relu")
    jax.block_until_ready(y3)
    y3_ref = lax.conv_general_dilated(
        x_bf, w_bf, window_strides=(2, 2), padding=[(pad, pad)] * 2,
        dimension_numbers=("NCHW", "OIHW", "NCHW"),
        preferred_element_type=jnp.float32) + bias.reshape(1, -1, 1, 1)
    y3_ref = jnp.maximum(y3_ref, 0.0)
    assert y3.shape == y3_ref.shape, (y3.shape, y3_ref.shape)
    err3 = float(jnp.max(jnp.abs(y3 - y3_ref)))
    assert jnp.allclose(y3, y3_ref, atol=2e-3, rtol=2e-2), err3

    print("KERNEL_OK")
</pallas_src>

<mosaic_0001>
module attributes {stable_mosaic.version = 11 : i64} {
  func.func @_conv_tile_kernel(%arg0: i32, %arg1: i32, %arg2: memref<1x10x18x4xbf16, #tpu.memory_space<vmem>>, %arg3: memref<9x4x128xbf16, #tpu.memory_space<vmem>>, %arg4: memref<1x128xf32, #tpu.memory_space<vmem>>, %arg5: memref<1x8x16x128xf32, #tpu.memory_space<vmem>>) attributes {dimension_semantics = [#tpu.dimension_semantics<parallel>, #tpu.dimension_semantics<parallel>], iteration_bounds = array<i64: 1, 4>, scalar_prefetch = 0 : i64, scratch_operands = 0 : i64, tpu.core_type = #tpu.core_type<tc>, window_params = [{transform_indices = @transform_0, window_bounds = array<i64: 1, 10, 18, 4>}, {transform_indices = @transform_1, window_bounds = array<i64: 9, 4, 128>}, {transform_indices = @transform_2, window_bounds = array<i64: 1, 128>}, {transform_indices = @transform_3, window_bounds = array<i64: 1, 8, 16, 128>}]} {
    %cst = arith.constant 0.000000e+00 : f32
    %0 = vector.broadcast %cst : f32 to vector<128x128xf32>
    %c0 = arith.constant 0 : index
    %c0_0 = arith.constant 0 : index
    %c0_1 = arith.constant 0 : index
    %c0_2 = arith.constant 0 : index
    %1 = vector.load %arg2[%c0, %c0_0, %c0_1, %c0_2] : memref<1x10x18x4xbf16, #tpu.memory_space<vmem>>, vector<1x8x16x4xbf16>
    %2 = vector.shape_cast %1 : vector<1x8x16x4xbf16> to vector<8x16x4xbf16>
    %3 = vector.shape_cast %2 : vector<8x16x4xbf16> to vector<128x4xbf16>
    %c0_3 = arith.constant 0 : index
    %c0_4 = arith.constant 0 : index
    %c0_5 = arith.constant 0 : index
    %4 = vector.load %arg3[%c0_3, %c0_4, %c0_5] : memref<9x4x128xbf16, #tpu.memory_space<vmem>>, vector<1x4x128xbf16>
    %5 = vector.shape_cast %4 : vector<1x4x128xbf16> to vector<4x128xbf16>
    %cst_6 = arith.constant dense<0.000000e+00> : vector<128x128xf32>
    %6 = tpu.matmul %3, %5, %cst_6 {dimension_numbers = #tpu.dot_dimension_numbers<[1], [0], [0], [1], [0, 0, 1, 1], [], []>} : vector<128x4xbf16>, vector<4x128xbf16>, vector<128x128xf32> -> vector<128x128xf32>
    %7 = arith.addf %0, %6 : vector<128x128xf32>
    %c0_7 = arith.constant 0 : index
    %c0_8 = arith.constant 0 : index
    %c1 = arith.constant 1 : index
    %c0_9 = arith.constant 0 : index
    %8 = vector.load %arg2[%c0_7, %c0_8, %c1, %c0_9] : memref<1x10x18x4xbf16, #tpu.memory_space<vmem>>, vector<1x8x16x4xbf16>
    %9 = vector.shape_cast %8 : vector<1x8x16x4xbf16> to vector<8x16x4xbf16>
    %10 = vector.shape_cast %9 : vector<8x16x4xbf16> to vector<128x4xbf16>
    %c1_10 = arith.constant 1 : index
    %c0_11 = arith.constant 0 : index
    %c0_12 = arith.constant 0 : index
    %11 = vector.load %arg3[%c1_10, %c0_11, %c0_12] : memref<9x4x128xbf16, #tpu.memory_space<vmem>>, vector<1x4x128xbf16>
    %12 = vector.shape_cast %11 : vector<1x4x128xbf16> to vector<4x128xbf16>
    %cst_13 = arith.constant dense<0.000000e+00> : vector<128x128xf32>
    %13 = tpu.matmul %10, %12, %cst_13 {dimension_numbers = #tpu.dot_dimension_numbers<[1], [0], [0], [1], [0, 0, 1, 1], [], []>} : vector<128x4xbf16>, vector<4x128xbf16>, vector<128x128xf32> -> vector<128x128xf32>
    %14 = arith.addf %7, %13 : vector<128x128xf32>
    %c0_14 = arith.constant 0 : index
    %c0_15 = arith.constant 0 : index
    %c2 = arith.constant 2 : index
    %c0_16 = arith.constant 0 : index
    %15 = vector.load %arg2[%c0_14, %c0_15, %c2, %c0_16] : memref<1x10x18x4xbf16, #tpu.memory_space<vmem>>, vector<1x8x16x4xbf16>
    %16 = vector.shape_cast %15 : vector<1x8x16x4xbf16> to vector<8x16x4xbf16>
    %17 = vector.shape_cast %16 : vector<8x16x4xbf16> to vector<128x4xbf16>
    %c2_17 = arith.constant 2 : index
    %c0_18 = arith.constant 0 : index
    %c0_19 = arith.constant 0 : index
    %18 = vector.load %arg3[%c2_17, %c0_18, %c0_19] : memref<9x4x128xbf16, #tpu.memory_space<vmem>>, vector<1x4x128xbf16>
    %19 = vector.shape_cast %18 : vector<1x4x128xbf16> to vector<4x128xbf16>
    %cst_20 = arith.constant dense<0.000000e+00> : vector<128x128xf32>
    %20 = tpu.matmul %17, %19, %cst_20 {dimension_numbers = #tpu.dot_dimension_numbers<[1], [0], [0], [1], [0, 0, 1, 1], [], []>} : vector<128x4xbf16>, vector<4x128xbf16>, vector<128x128xf32> -> vector<128x128xf32>
    %21 = arith.addf %14, %20 : vector<128x128xf32>
    %c0_21 = arith.constant 0 : index
    %c1_22 = arith.constant 1 : index
    %c0_23 = arith.constant 0 : index
    %c0_24 = arith.constant 0 : index
    %22 = vector.load %arg2[%c0_21, %c1_22, %c0_23, %c0_24] : memref<1x10x18x4xbf16, #tpu.memory_space<vmem>>, vector<1x8x16x4xbf16>
    %23 = vector.shape_cast %22 : vector<1x8x16x4xbf16> to vector<8x16x4xbf16>
    %24 = vector.shape_cast %23 : vector<8x16x4xbf16> to vector<128x4xbf16>
    %c3 = arith.constant 3 : index
    %c0_25 = arith.constant 0 : index
    %c0_26 = arith.constant 0 : index
    %25 = vector.load %arg3[%c3, %c0_25, %c0_26] : memref<9x4x128xbf16, #tpu.memory_space<vmem>>, vector<1x4x128xbf16>
    %26 = vector.shape_cast %25 : vector<1x4x128xbf16> to vector<4x128xbf16>
    %cst_27 = arith.constant dense<0.000000e+00> : vector<128x128xf32>
    %27 = tpu.matmul %24, %26, %cst_27 {dimension_numbers = #tpu.dot_dimension_numbers<[1], [0], [0], [1], [0, 0, 1, 1], [], []>} : vector<128x4xbf16>, vector<4x128xbf16>, vector<128x128xf32> -> vector<128x128xf32>
    %28 = arith.addf %21, %27 : vector<128x128xf32>
    %c0_28 = arith.constant 0 : index
    %c1_29 = arith.constant 1 : index
    %c1_30 = arith.constant 1 : index
    %c0_31 = arith.constant 0 : index
    %29 = vector.load %arg2[%c0_28, %c1_29, %c1_30, %c0_31] : memref<1x10x18x4xbf16, #tpu.memory_space<vmem>>, vector<1x8x16x4xbf16>
    %30 = vector.shape_cast %29 : vector<1x8x16x4xbf16> to vector<8x16x4xbf16>
    %31 = vector.shape_cast %30 : vector<8x16x4xbf16> to vector<128x4xbf16>
    %c4 = arith.constant 4 : index
    %c0_32 = arith.constant 0 : index
    %c0_33 = arith.constant 0 : index
    %32 = vector.load %arg3[%c4, %c0_32, %c0_33] : memref<9x4x128xbf16, #tpu.memory_space<vmem>>, vector<1x4x128xbf16>
    %33 = vector.shape_cast %32 : vector<1x4x128xbf16> to vector<4x128xbf16>
    %cst_34 = arith.constant dense<0.000000e+00> : vector<128x128xf32>
    %34 = tpu.matmul %31, %33, %cst_34 {dimension_numbers = #tpu.dot_dimension_numbers<[1], [0], [0], [1], [0, 0, 1, 1], [], []>} : vector<128x4xbf16>, vector<4x128xbf16>, vector<128x128xf32> -> vector<128x128xf32>
    %35 = arith.addf %28, %34 : vector<128x128xf32>
    %c0_35 = arith.constant 0 : index
    %c1_36 = arith.constant 1 : index
    %c2_37 = arith.constant 2 : index
    %c0_38 = arith.constant 0 : index
    %36 = vector.load %arg2[%c0_35, %c1_36, %c2_37, %c0_38] : memref<1x10x18x4xbf16, #tpu.memory_space<vmem>>, vector<1x8x16x4xbf16>
    %37 = vector.shape_cast %36 : vector<1x8x16x4xbf16> to vector<8x16x4xbf16>
    %38 = vector.shape_cast %37 : vector<8x16x4xbf16> to vector<128x4xbf16>
    %c5 = arith.constant 5 : index
    %c0_39 = arith.constant 0 : index
    %c0_40 = arith.constant 0 : index
    %39 = vector.load %arg3[%c5, %c0_39, %c0_40] : memref<9x4x128xbf16, #tpu.memory_space<vmem>>, vector<1x4x128xbf16>
    %40 = vector.shape_cast %39 : vector<1x4x128xbf16> to vector<4x128xbf16>
    %cst_41 = arith.constant dense<0.000000e+00> : vector<128x128xf32>
    %41 = tpu.matmul %38, %40, %cst_41 {dimension_numbers = #tpu.dot_dimension_numbers<[1], [0], [0], [1], [0, 0, 1, 1], [], []>} : vector<128x4xbf16>, vector<4x128xbf16>, vector<128x128xf32> -> vector<128x128xf32>
    %42 = arith.addf %35, %41 : vector<128x128xf32>
    %c0_42 = arith.constant 0 : index
    %c2_43 = arith.constant 2 : index
    %c0_44 = arith.constant 0 : index
    %c0_45 = arith.constant 0 : index
    %43 = vector.load %arg2[%c0_42, %c2_43, %c0_44, %c0_45] : memref<1x10x18x4xbf16, #tpu.memory_space<vmem>>, vector<1x8x16x4xbf16>
    %44 = vector.shape_cast %43 : vector<1x8x16x4xbf16> to vector<8x16x4xbf16>
    %45 = vector.shape_cast %44 : vector<8x16x4xbf16> to vector<128x4xbf16>
    %c6 = arith.constant 6 : index
    %c0_46 = arith.constant 0 : index
    %c0_47 = arith.constant 0 : index
    %46 = vector.load %arg3[%c6, %c0_46, %c0_47] : memref<9x4x128xbf16, #tpu.memory_space<vmem>>, vector<1x4x128xbf16>
    %47 = vector.shape_cast %46 : vector<1x4x128xbf16> to vector<4x128xbf16>
    %cst_48 = arith.constant dense<0.000000e+00> : vector<128x128xf32>
    %48 = tpu.matmul %45, %47, %cst_48 {dimension_numbers = #tpu.dot_dimension_numbers<[1], [0], [0], [1], [0, 0, 1, 1], [], []>} : vector<128x4xbf16>, vector<4x128xbf16>, vector<128x128xf32> -> vector<128x128xf32>
    %49 = arith.addf %42, %48 : vector<128x128xf32>
    %c0_49 = arith.constant 0 : index
    %c2_50 = arith.constant 2 : index
    %c1_51 = arith.constant 1 : index
    %c0_52 = arith.constant 0 : index
    %50 = vector.load %arg2[%c0_49, %c2_50, %c1_51, %c0_52] : memref<1x10x18x4xbf16, #tpu.memory_space<vmem>>, vector<1x8x16x4xbf16>
    %51 = vector.shape_cast %50 : vector<1x8x16x4xbf16> to vector<8x16x4xbf16>
    %52 = vector.shape_cast %51 : vector<8x16x4xbf16> to vector<128x4xbf16>
    %c7 = arith.constant 7 : index
    %c0_53 = arith.constant 0 : index
    %c0_54 = arith.constant 0 : index
    %53 = vector.load %arg3[%c7, %c0_53, %c0_54] : memref<9x4x128xbf16, #tpu.memory_space<vmem>>, vector<1x4x128xbf16>
    %54 = vector.shape_cast %53 : vector<1x4x128xbf16> to vector<4x128xbf16>
    %cst_55 = arith.constant dense<0.000000e+00> : vector<128x128xf32>
    %55 = tpu.matmul %52, %54, %cst_55 {dimension_numbers = #tpu.dot_dimension_numbers<[1], [0], [0], [1], [0, 0, 1, 1], [], []>} : vector<128x4xbf16>, vector<4x128xbf16>, vector<128x128xf32> -> vector<128x128xf32>
    %56 = arith.addf %49, %55 : vector<128x128xf32>
    %c0_56 = arith.constant 0 : index
    %c2_57 = arith.constant 2 : index
    %c2_58 = arith.constant 2 : index
    %c0_59 = arith.constant 0 : index
    %57 = vector.load %arg2[%c0_56, %c2_57, %c2_58, %c0_59] : memref<1x10x18x4xbf16, #tpu.memory_space<vmem>>, vector<1x8x16x4xbf16>
    %58 = vector.shape_cast %57 : vector<1x8x16x4xbf16> to vector<8x16x4xbf16>
    %59 = vector.shape_cast %58 : vector<8x16x4xbf16> to vector<128x4xbf16>
    %c8 = arith.constant 8 : index
    %c0_60 = arith.constant 0 : index
    %c0_61 = arith.constant 0 : index
    %60 = vector.load %arg3[%c8, %c0_60, %c0_61] : memref<9x4x128xbf16, #tpu.memory_space<vmem>>, vector<1x4x128xbf16>
    %61 = vector.shape_cast %60 : vector<1x4x128xbf16> to vector<4x128xbf16>
    %cst_62 = arith.constant dense<0.000000e+00> : vector<128x128xf32>
    %62 = tpu.matmul %59, %61, %cst_62 {dimension_numbers = #tpu.dot_dimension_numbers<[1], [0], [0], [1], [0, 0, 1, 1], [], []>} : vector<128x4xbf16>, vector<4x128xbf16>, vector<128x128xf32> -> vector<128x128xf32>
    %63 = arith.addf %56, %62 : vector<128x128xf32>
    %c0_63 = arith.constant 0 : index
    %c0_64 = arith.constant 0 : index
    %64 = vector.load %arg4[%c0_63, %c0_64] : memref<1x128xf32, #tpu.memory_space<vmem>>, vector<1x128xf32>
    %65 = vector.broadcast %64 : vector<1x128xf32> to vector<128x128xf32>
    %66 = arith.addf %63, %65 : vector<128x128xf32>
    %67 = vector.shape_cast %66 : vector<128x128xf32> to vector<1x8x16x128xf32>
    %c0_65 = arith.constant 0 : index
    %c0_66 = arith.constant 0 : index
    %c0_67 = arith.constant 0 : index
    %c0_68 = arith.constant 0 : index
    %68 = vector.load %arg5[%c0_65, %c0_66, %c0_67, %c0_68] : memref<1x8x16x128xf32, #tpu.memory_space<vmem>>, vector<1x8x16x128xf32>
    tpu.vector_store %arg5[%c0_65, %c0_66, %c0_67, %c0_68], %67 {strides = array<i32>} : memref<1x8x16x128xf32, #tpu.memory_space<vmem>>, vector<1x8x16x128xf32>,
    return
  }
  func.func @transform_0(%arg0: i32, %arg1: i32) -> (i32, i32, i32, i32) {
    %c0_i32 = arith.constant 0 : i32
    %c0_i32_0 = arith.constant 0 : i32
    %c0_i32_1 = arith.constant 0 : i32
    %c0_i32_2 = arith.constant 0 : i32
    return %arg1, %c0_i32, %c0_i32_0, %c0_i32_1 : i32, i32, i32, i32
  }
  func.func @transform_1(%arg0: i32, %arg1: i32) -> (i32, i32, i32) {
    %c0_i32 = arith.constant 0 : i32
    %c0_i32_0 = arith.constant 0 : i32
    %c0_i32_1 = arith.constant 0 : i32
    return %c0_i32, %c0_i32_0, %arg0 : i32, i32, i32
  }
  func.func @transform_2(%arg0: i32, %arg1: i32) -> (i32, i32) {
    %c0_i32 = arith.constant 0 : i32
    %c0_i32_0 = arith.constant 0 : i32
    return %c0_i32, %arg0 : i32, i32
  }
  func.func @transform_3(%arg0: i32, %arg1: i32) -> (i32, i32, i32, i32) {
    %c0_i32 = arith.constant 0 : i32
    %c0_i32_0 = arith.constant 0 : i32
    %c0_i32_1 = arith.constant 0 : i32
    return %arg1, %c0_i32, %c0_i32_0, %arg0 : i32, i32, i32, i32
  }
}

</mosaic_0001>

<bundles_post_ra>
// kernel: tpu_custom_call.1
= control target key start
LH: loop header
LB: loop body
LE: loop exit
PB: predicated region body
PF: predicated region fallthrough
CT: control target
= control target key end

     0   :  { %8 = vsyncpa [#allocation3], 0  ;;  %s4696_s0 = inlined_call_operand.vmem [shape: bf16[4,10,18,4], index: 0, kind: input, shape index: {}]   ;;  %s4697_s1 = inlined_call_operand.vmem [shape: bf16[9,4,128], index: 1, kind: input, shape index: {}]   ;;  %s4698_s2 = inlined_call_operand.vmem [shape: f32[1,128], index: 2, kind: input, shape index: {}]   ;;  %s4699_s3 = inlined_call_operand.hbm [shape: f32[4,8,16,128], index: 3, kind: output, shape index: {}]  }
   0x1   :  { %10 = vsyncpa [#allocation3 + $0x1], 0  ;;  %s3680_s12 = smov 0   ;;  %s3682_s13 = smov 0  }
   0x2   :  { %s3684_s14 = smov 0   ;;  %s3686_s15 = smov 0  }
   0x3   :  { %s3688_s16 = smov 0   ;;  %s3690_s17 = smov 0  }
   0x4 LB: > { %s2823_s18 = sadd.s32 4294967295, %s3655_s17   ;;  %s2824_s19 = sadd.s32 4294967294, %s3655_s17   ;;  %s3655_s17 = sphi %s3690_s17, %s16_s17   ;;  %s3651_s16 = sphi %s3688_s16, %s4728_s16   ;;  %s3647_s15 = sphi %s3686_s15, %s4727_s15   ;;  %s3643_s14 = sphi %s3684_s14, %s4726_s14   ;;  %s3639_s13 = sphi %s3682_s13, %s4725_s13   ;;  %s3635_s12 = sphi %s3680_s12, %s4724_s12  }
   0x5   : > { %s25_s20 = sadd.s32 1, %s3651_s16  ;;  %s115_s21 = sadd.s32 1, %s3643_s14 }
   0x6   : > { %p26_p0 = scmp.ge.s32.totalorder %s25_s20, 4  ;;  %p125_p1 = scmp.ne.s32.totalorder %s3643_s14, %s3639_s13 }
   0x7   : > { %p126_p2 = scmp.eq.s32.totalorder %s2823_s18, 3  ;;  %p131_p3 = scmp.ne.s32.totalorder %s3639_s13, %s3635_s12 }
   0x8   : > { %s4730_s20 = smov (%p26_p0, %s25_s20), 0  ;;  %p132_p5 = scmp.eq.s32.totalorder %s2824_s19, 3 }
   0x9   : > { %p3720_p4 = por %p126_p2, %p125_p1  ;;  %s110_s23 = ssub.s32 %s3651_s16, %s4730_s20 }
   0xa   : > { %p2829_p6 = scmp.ge.s32.totalorder %s3655_s17, 1  ;;  %p113_p7 = scmp.eq.s32.totalorder %s110_s23, 0 }
   0xb   : > { %p3727_p8 = por %p132_p5, %p131_p3  ;;  %p171_p9 = scmp.lt.s32.totalorder %s3655_s17, 5 }
   0xc   : > { %s3733_s25 = scalar_select %p113_p7, %s3643_s14, %s115_s21  }
   0xd   : > { %p172_p10 = pnand %p2829_p6, %p171_p9 }
   0xf   : > { %175 = sbr.rel (%p172_p10) target bundleno = 439 (0x1b7), region = 32 }
  0x16   : > { %v2832_v0 = vld [vmem:[%s4697_s1 + $0x2] sm:$0x3]  ;;  %vm486_vm0 = vcmask 1041408   ;;  %v2947_v1 = vld [vmem:[%s4697_s1 + $0x8] sm:$0x3]  ;;  %p202_p11 = scmp.lt.s32.totalorder %s3647_s15, 3 }
  0x17   : > { %3484 = vmatprep.subr.msk.bf16.mxu1 %vm486_vm0, %v2832_v0  ;;  %3488 = vmatprep.subr.msk.bf16.mxu0 %vm486_vm0, %v2947_v1  ;;  %v488_v2 = vsel %vm486_vm0, %v2832_v0, 0  ;;  %v3746_v3 = vsel %vm486_vm0, %v2947_v1, 0  ;;  %v231_v4 = vld [vmem:[%s4697_s1] sm:$0x3]  ;;  %v2980_v5 = vld [vmem:[%s4697_s1 + $0xa] sm:$0x3] }
  0x18   : > { %3193 = vmatpush3.bf16.msra.mxu1 %v488_v2  ;;  %3265 = vmatpush3.bf16.msra.mxu0 %v3746_v3  ;;  %s203_s30 = scalar_select %p202_p11, %s3647_s15, 3  ;;  %vm240_vm1 = vsmask.f32 3328  ;;  %vm241_vm2 = vsmask.f32 7440  ;;  %vm461_vm3 = vcmask 31744  }
  0x19   : > { %3485 = vmatprep.subr.msk.bf16.mxu1 %vm486_vm0, %v231_v4  ;;  %3490 = vmatprep.subr.msk.bf16.mxu0 %vm486_vm0, %v2980_v5  ;;  %v3785_v17 = vsel %vm486_vm0, %v231_v4, 0  ;;  %v3791_v26 = vld [vmem:[%s4697_s1 + $0xc] sm:$0x3]  ;;  %vm3800_vm4 = vmor %vm240_vm1, %vm241_vm2  ;;  %v3808_v37 = vsel %vm486_vm0, %v2980_v5, 0  ;;  %vm775_vm5 = vcmask 1042432   ;;  %vm776_vm6 = vcmask 1046532  }
  0x1a   : > { %s3494_s8 = smul.u32 120, %s203_s30  ;;  %v3812_v41 = vsel %vm486_vm0, %v3791_v26, 0  ;;  %vm3955_vm7 = vmor %vm775_vm5, %vm776_vm6  ;;  %s199_s7 = sand.u32 1, %s3639_s13   ;;  %v4603_v32 = vld [vmem:[%s4698_s2] ss:$0 sm:$0xff] }
  0x1b   : > { %s3110_s18 = sshll.u32 %s3647_s15, 11  ;;  %s4650_s15 = scalar_lea.sflag [#allocation3], %s199_s7 }
  0x1c   : > { %s3761_s11 = scalar_lea.vmem %s4696_s0, %s3494_s8  ;;  %s2830_s8 = sshll.u32 %s199_s7, 7 }
  0x1d   : > { %v3764_v6 = vld [vmem:[%s3761_s11] sm:$0xf]  ;;  %v3767_v7 = vld [vmem:[%s3761_s11 + $0x4] sm:$0xf]  ;;  %v3770_v8 = vld [vmem:[%s3761_s11 + $0x8] sm:$0x1]  ;;  %s4640_s26 = scalar_lea.hbm %s4699_s3, %s3110_s18 }
  0x1e   : > { %v244_v9 = vshrl.u32 %v3764_v6, 16  ;;  %v247_v10 = vshll.u32 %v3764_v6, 16  ;;  %v253_v11 = vshll.u32 %v3767_v7, 16  ;;  %v257_v12 = vshrl.u32 %v3767_v7, 16  ;;  %v2923_v13 = vld [vmem:[%s3761_s11 + $0xc] sm:$0xf] }
  0x1f   : > { %v263_v14 = vshll.u32 %v3770_v8, 16  ;;  %v3779_v15 = vld [vmem:[%s3761_s11 + $0x10] sm:$0xf]  ;;  %v3782_v16 = vld [vmem:[%s3761_s11 + $0x14] sm:$0x1]  ;;  %v1224_v23 = vshrl.u32 %v2923_v13, 16 }
  0x20   : > { %v246_v18 = vrot.slane %v244_v9, 4  ;;  %v249_v19 = vrot.slane %v247_v10, 5  ;;  %v255_v20 = vrot.slane %v253_v11, 5  ;;  %v259_v21 = vrot.slane %v257_v12, 4  ;;  %v3796_v31 = vld [vmem:[%s3761_s11 + $0xc] sm:$0xf] }
  0x21   : > { %v265_v22 = vrot.slane %v263_v14, 5  ;;  %v1227_v24 = vshll.u32 %v2923_v13, 16  ;;  %v1233_v25 = vshll.u32 %v3779_v15, 16  ;;  %v1237_v29 = vshrl.u32 %v3779_v15, 16  ;;  %v3805_v36 = vld [vmem:[%s3761_s11 + $0x10] sm:$0xf] }
  0x22   : > { %v250_v27 = vor.u32 %v249_v19, %v246_v18  ;;  %v260_v28 = vor.u32 %v259_v21, %v255_v20  ;;  %v1243_v30 = vshll.u32 %v3782_v16, 16  ;;  %v1226_v33 = vrot.slane %v1224_v23, 4  ;;  %v3815_v44 = vld [vmem:[%s3761_s11 + $0x14] sm:$0x1]  ;;  %v2926_v55 = vld [vmem:[%s3761_s11 + $0x18] sm:$0xf] }
  0x23   : > { %v1229_v34 = vrot.slane %v1227_v24, 5  ;;  %v1235_v35 = vrot.slane %v1233_v25, 5  ;;  %v1239_v40 = vrot.slane %v1237_v29, 4  ;;  %v268_v45 = vshrl.u32 %v3796_v31, 16  ;;  %v3828_v60 = vld [vmem:[%s3761_s11 + $0x1c] sm:$0xf] }
  0x24   : > { %v251_v38 = vrot.slane %v250_v27, 4  ;;  %v261_v39 = vrot.slane %v260_v28, 4  ;;  %v1245_v43 = vrot.slane %v1243_v30, 5  ;;  %v271_v46 = vshll.u32 %v3796_v31, 16  ;;  %v3836_v1 = vld [vmem:[%s3761_s11 + $0x20] sm:$0x1] }
  0x25   : > { %v1230_v42 = vor.u32 %v1229_v34, %v1226_v33  ;;  %v1240_v49 = vor.u32 %v1239_v40, %v1235_v35  ;;  %v277_v50 = vshll.u32 %v3805_v36, 16  ;;  %v270_v53 = vrot.slane %v268_v45, 4  ;;  %v3844_v21 = vld [vmem:[%s3761_s11 + $0x18] sm:$0xf]  ;;  %v3851_v27 = vld [vmem:[%s3761_s11 + $0x1c] sm:$0xf] }
  0x26   : > { %v256_v47 = vsel %vm3800_vm4, %v251_v38, %v255_v20  ;;  %v266_v48 = vsel %vm3800_vm4, %v261_v39, %v265_v22  ;;  %v273_v54 = vrot.slane %v271_v46, 5  ;;  %v281_v58 = vshrl.u32 %v3805_v36, 16  ;;  %v3859_v38 = vld [vmem:[%s3761_s11 + $0x20] sm:$0x1]  ;;  %s3657_s28 = smov [#allocation2]  }
  0x27   : > { %v2833_v51 = vcombine.low %v256_v47, %v266_v48  ;;  %v1231_v52 = vrot.slane %v1230_v42, 4  ;;  %v1241_v56 = vrot.slane %v1240_v49, 4  ;;  %v279_v57 = vrot.slane %v277_v50, 5  ;;  %v2929_v47 = vld [vmem:[%s3761_s11 + $0x24] sm:$0xf]  ;;  %s3581_s29 = sshll.u32 %s3657_s28, 4  ;;  %s3582_s29 = int_to_ptr.vmem [resolvable:$false] %s3581_s29 }
  0x28   : > { %v287_v59 = vshll.u32 %v3815_v44, 16  ;;  %v1615_v62 = vrot.slane %v3779_v15, 5  ;;  %v1618_v63 = vrot.slane %v3782_v16, 5  ;;  %v274_v0 = vor.u32 %v273_v54, %v270_v53  ;;  %s3583_s30 = scalar_lea.vmem %s3582_s29, 4096 }
  0x29   : > { %3194 = vmatprep.mubr.msk.bf16.mxu1 %vm461_vm3, %v2833_v51  ;;  %v1236_v61 = vsel %vm3800_vm4, %v1231_v52, %v1235_v35  ;;  %v1246_v2 = vsel %vm3800_vm4, %v1241_v56, %v1245_v43  ;;  %v283_v4 = vrot.slane %v281_v58, 4  ;;  %v1248_v9 = vshrl.u32 %v2926_v55, 16  ;;  %v3869_v52 = vld [vmem:[%s3761_s11 + $0x28] sm:$0xf] }
  0x2a   : > { %v289_v5 = vrot.slane %v287_v59, 5  ;;  %v2948_v10 = vcombine.low %v1236_v61, %v1246_v2  ;;  %v275_v11 = vrot.slane %v274_v0, 4  ;;  %v1251_v12 = vshll.u32 %v2926_v55, 16  ;;  %v3881_v61 = vld [vmem:[%s3761_s11 + $0x2c] sm:$0x1] }
  0x2b   : > { %v1257_v13 = vshll.u32 %v3828_v60, 16  ;;  %v284_v14 = vor.u32 %v283_v4, %v279_v57  ;;  %v1250_v18 = vrot.slane %v1248_v9, 4  ;;  %v1261_v19 = vshrl.u32 %v3828_v60, 16 }
  0x2c   : > { %v1267_v20 = vshll.u32 %v3836_v1, 16  ;;  %3266 = vmatprep.mubr.msk.bf16.mxu0 %vm461_vm3, %v2948_v10  ;;  %v280_v22 = vsel %vm3800_vm4, %v275_v11, %v279_v57  ;;  %v1253_v23 = vrot.slane %v1251_v12, 5  ;;  %v1622_v25 = vrot.slane %v3828_v60, 5  ;;  %v3875_v57 = vld [vmem:[%s4697_s1 + $0x4] sm:$0x3] }
  0x2d   : > { %v1259_v24 = vrot.slane %v1257_v13, 5  ;;  %v285_v28 = vrot.slane %v284_v14, 4  ;;  %v1263_v29 = vrot.slane %v1261_v19, 4  ;;  %v1625_v33 = vrot.slane %v3836_v1, 5  ;;  %v3888_v11 = vld [vmem:[%s3761_s11 + $0x24] sm:$0xf] }
  0x2e   : > { %v1269_v30 = vrot.slane %v1267_v20, 5  ;;  %v1254_v34 = vor.u32 %v1253_v23, %v1250_v18  ;;  %v3856_v35 = vrot.slane %v1622_v25, 4  ;;  %v292_v39 = vshrl.u32 %v3844_v21, 16  ;;  %v3891_v19 = vld [vmem:[%s3761_s11 + $0x28] sm:$0xf] }
  0x2f   : > { %v295_v40 = vshll.u32 %v3844_v21, 16  ;;  %v290_v42 = vsel %vm3800_vm4, %v285_v28, %v289_v5  ;;  %v1264_v43 = vor.u32 %v1263_v29, %v1259_v24  ;;  %v301_v45 = vshll.u32 %v3851_v27, 16  ;;  %v3901_v29 = vld [vmem:[%s3761_s11 + $0x2c] sm:$0x1] }
  0x30   : > { %v305_v46 = vshrl.u32 %v3851_v27, 16  ;;  %v2834_v48 = vcombine.low %v280_v22, %v290_v42  ;;  %v1255_v49 = vrot.slane %v1254_v34, 4  ;;  %v294_v50 = vrot.slane %v292_v39, 4 }
  0x31   : > { %v297_v51 = vrot.slane %v295_v40, 5  ;;  %v1265_v53 = vrot.slane %v1264_v43, 4  ;;  %v303_v54 = vrot.slane %v301_v45, 5  ;;  %v311_v56 = vshll.u32 %v3859_v38, 16  ;;  %v2932_v45 = vld [vmem:[%s3761_s11 + $0x30] sm:$0xf] }
  0x32   : > { %v307_v55 = vrot.slane %v305_v46, 4  ;;  %3195 = vmatmul.mubr.msk.bf16.vlgmr.msra.gmra.mrb[0].mxu1 %vm461_vm3, %v2834_v48  ;;  %v1260_v58 = vsel %vm3800_vm4, %v1255_v49, %v1259_v24  ;;  %v1272_v0 = vshrl.u32 %v2929_v47, 16  ;;  %v1275_v2 = vshll.u32 %v2929_v47, 16 }
  0x33   : > { %v298_v59 = vor.u32 %v297_v51, %v294_v50  ;;  %3211 = vmatpush3.bf16.msra.mxu1 %v3785_v17  ;;  %v1270_v4 = vsel %vm3800_vm4, %v1265_v53, %v1269_v30  ;;  %v313_v9 = vrot.slane %v311_v56, 5  ;;  %v1281_v10 = vshll.u32 %v3869_v52, 16  ;;  %v3911_v50 = vld [vmem:[%s3761_s11 + $0x34] sm:$0xf] }
  0x34   : > { %v308_v5 = vor.u32 %v307_v55, %v303_v54  ;;  %v2949_v12 = vcombine.low %v1260_v58, %v1270_v4  ;;  %v1274_v14 = vrot.slane %v1272_v0, 4  ;;  %v1277_v18 = vrot.slane %v1275_v2, 5  ;;  %3486 = vmatprep.subr.msk.bf16.mxu1 %vm486_vm0, %v3875_v57  ;;  %v3921_v58 = vld [vmem:[%s3761_s11 + $0x38] sm:$0x1] }
  0x35   : > { %v299_v13 = vrot.slane %v298_v59, 4  ;;  %v1283_v20 = vrot.slane %v1281_v10, 5  ;;  %v1285_v22 = vshrl.u32 %v3869_v52, 16  ;;  %v1291_v23 = vshll.u32 %v3881_v61, 16 }
  0x36   : > { %v309_v17 = vrot.slane %v308_v5, 4  ;;  %3267 = vmatmul.mubr.msk.bf16.vlgmr.msra.gmra.mrb[0].mxu0 %vm461_vm3, %v2949_v12  ;;  %v1278_v28 = vor.u32 %v1277_v18, %v1274_v14  ;;  %v316_v30 = vshrl.u32 %v3888_v11, 16  ;;  %v319_v34 = vshll.u32 %v3888_v11, 16  ;;  %v3926_v14 = vld [vmem:[%s3761_s11 + $0x30] sm:$0xf] }
  0x37   : > { %v304_v24 = vsel %vm3800_vm4, %v299_v13, %v303_v54  ;;  %3283 = vmatpush3.bf16.msra.mxu0 %v3808_v37  ;;  %v1287_v40 = vrot.slane %v1285_v22, 4  ;;  %v1293_v42 = vrot.slane %v1291_v23, 5  ;;  %v325_v43 = vshll.u32 %v3891_v19, 16  ;;  %v3932_v23 = vld [vmem:[%s3761_s11 + $0x34] sm:$0xf] }
  0x38   : > { %v314_v39 = vsel %vm3800_vm4, %v309_v17, %v313_v9  ;;  %v1279_v47 = vrot.slane %v1278_v28, 4  ;;  %v318_v48 = vrot.slane %v316_v30, 4  ;;  %v321_v49 = vrot.slane %v319_v34, 5  ;;  %3491 = vmatprep.subr.msk.bf16.mxu0 %vm486_vm0, %v3791_v26 }
  0x39   : > { %v2835_v46 = vcombine.low %v304_v24, %v314_v39  ;;  %v1288_v37 = vor.u32 %v1287_v40, %v1283_v20  ;;  %v327_v51 = vrot.slane %v325_v43, 5  ;;  %v329_v53 = vshrl.u32 %v3891_v19, 16  ;;  %v3937_v39 = vld [vmem:[%s3761_s11 + $0x38] sm:$0x1] }
  0x3a   : > { %v335_v54 = vshll.u32 %v3901_v29, 16  ;;  %v1284_v55 = vsel %vm3800_vm4, %v1279_v47, %v1283_v20  ;;  %v322_v56 = vor.u32 %v321_v49, %v318_v48  ;;  %v1296_v59 = vshrl.u32 %v2932_v45, 16 }
  0x3b   : > { %3198 = vmatprep.mubr.msk.bf16.mxu1 %vm461_vm3, %v2835_v46  ;;  %v1299_v0 = vshll.u32 %v2932_v45, 16  ;;  %v1289_v2 = vrot.slane %v1288_v37, 4  ;;  %v331_v26 = vrot.slane %v329_v53, 4  ;;  %v1305_v5 = vshll.u32 %v3911_v50, 16  ;;  %v2964_v37 = vld [vmem:[%s3761_s11 + $0xc] sm:$0xe] }
  0x3c   : > { %v337_v4 = vrot.slane %v335_v54, 5  ;;  %v323_v9 = vrot.slane %v322_v56, 4  ;;  %v1298_v10 = vrot.slane %v1296_v59, 4  ;;  %v1309_v13 = vshrl.u32 %v3911_v50, 16  ;;  %v3949_v56 = vld [vmem:[%s3761_s11 + $0x3c] sm:$0xf] }
  0x3d   : > { %v1301_v12 = vrot.slane %v1299_v0, 5  ;;  %v1294_v18 = vsel %vm3800_vm4, %v1289_v2, %v1293_v42  ;;  %v332_v17 = vor.u32 %v331_v26, %v327_v51  ;;  %v1307_v20 = vrot.slane %v1305_v5, 5 }
  0x3e   : > { %v1315_v22 = vshll.u32 %v3921_v58, 16  ;;  %v2950_v24 = vcombine.low %v1284_v55, %v1294_v18  ;;  %v328_v28 = vsel %vm3800_vm4, %v323_v9, %v327_v51  ;;  %v1311_v34 = vrot.slane %v1309_v13, 4  ;;  %v3963_v18 = vld [vmem:[%s3761_s11 + $0x44] sm:$0x1] }
  0x3f   : > { %v1302_v30 = vor.u32 %v1301_v12, %v1298_v10  ;;  %v333_v40 = vrot.slane %v332_v17, 4  ;;  %v340_v42 = vshrl.u32 %v3926_v14, 16  ;;  %v343_v45 = vshll.u32 %v3926_v14, 16  ;;  %v2965_v17 = vld [vmem:[%s3761_s11 + $0x18] sm:$0xe] }
  0x40   : > { %v1317_v43 = vrot.slane %v1315_v22, 5  ;;  %3270 = vmatprep.mubr.msk.bf16.mxu0 %vm461_vm3, %v2950_v24  ;;  %v1312_v47 = vor.u32 %v1311_v34, %v1307_v20  ;;  %v349_v48 = vshll.u32 %v3932_v23, 16  ;;  %v353_v49 = vshrl.u32 %v3932_v23, 16 }
  0x41   : > { %v1303_v46 = vrot.slane %v1302_v30, 4  ;;  %v338_v51 = vsel %vm3800_vm4, %v333_v40, %v337_v4  ;;  %v342_v53 = vrot.slane %v340_v42, 4  ;;  %v345_v54 = vrot.slane %v343_v45, 5  ;;  %v3960_v4 = vld [vmem:[%s3761_s11 + $0x40] sm:$0xf] }
  0x42   : > { %v359_v55 = vshll.u32 %v3937_v39, 16  ;;  %v2836_v59 = vcombine.low %v328_v28, %v338_v51  ;;  %v1313_v2 = vrot.slane %v1312_v47, 4  ;;  %v351_v26 = vrot.slane %v349_v48, 5  ;;  %v3974_v30 = vld [vmem:[%s3761_s11 + $0x48] sm:$0xf] }
  0x43   : > { %v1308_v0 = vsel %vm3800_vm4, %v1303_v46, %v1307_v20  ;;  %v346_v9 = vor.u32 %v345_v54, %v342_v53  ;;  %v355_v10 = vrot.slane %v353_v49, 4  ;;  %v2972_v13 = vrot.slane %v2964_v37, 9 }
  0x44   : > { %v361_v12 = vrot.slane %v359_v55, 5  ;;  %3199 = vmatmul.mubr.msk.bf16.gmra.mrb[4].mxu1 %vm461_vm3, %v2836_v59  ;;  %v1318_v20 = vsel %vm3800_vm4, %v1313_v2, %v1317_v43  ;;  %v1617_v22 = vrot.slane %v1615_v62, 4  ;;  %v364_v24 = vshrl.u32 %v3949_v56, 16  ;;  %v3994_v55 = vld [vmem:[%s3761_s11 + $0x50] sm:$0x1] }
  0x45   : > { %v367_v28 = vshll.u32 %v3949_v56, 16  ;;  %v2951_v34 = vcombine.low %v1308_v0, %v1318_v20  ;;  %v347_v40 = vrot.slane %v346_v9, 4  ;;  %v356_v42 = vor.u32 %v355_v10, %v351_v26 }
  0x46   : > { %v1616_v45 = vsel %vm3955_vm7, %v2972_v13, %v1615_v62  ;;  %v1619_v43 = vsel %vm3955_vm7, %v1617_v22, %v1618_v63  ;;  %v366_v46 = vrot.slane %v364_v24, 4  ;;  %v373_v48 = vshll.u32 %v3960_v4, 16  ;;  %v3990_v62 = vld [vmem:[%s3761_s11 + $0x4c] sm:$0xf] }
  0x47   : > { %v369_v47 = vrot.slane %v367_v28, 5  ;;  %3271 = vmatmul.mubr.msk.bf16.gmra.mrb[4].mxu0 %vm461_vm3, %v2951_v34  ;;  %v352_v49 = vsel %vm3800_vm4, %v347_v40, %v351_v26  ;;  %v357_v37 = vrot.slane %v356_v42, 4  ;;  %v2981_v15 = vcombine.low %v1616_v45, %v1619_v43  ;;  %v4012_v28 = vld [vmem:[%s3761_s11 + $0x54] sm:$0xf]  ;;  %v4023_v34 = vld [vmem:[%s4697_s1 + $0xe] sm:$0x3] }
  0x48   : > { %v377_v51 = vshrl.u32 %v3960_v4, 16  ;;  %v375_v53 = vrot.slane %v373_v48, 5  ;;  %v383_v63 = vshll.u32 %v3963_v18, 16  ;;  %v2973_v54 = vrot.slane %v2965_v17, 9 }
  0x49   : > { %v370_v16 = vor.u32 %v369_v47, %v366_v46  ;;  %v362_v59 = vsel %vm3800_vm4, %v357_v37, %v361_v12  ;;  %3284 = vmatprep.mubr.msk.bf16.mxu0 %vm461_vm3, %v2981_v15  ;;  %v1626_v2 = vsel %vm3955_vm7, %v3856_v35, %v1625_v33  ;;  %v388_v26 = vshrl.u32 %v3974_v30, 16  ;;  %v2966_v12 = vld [vmem:[%s3761_s11 + $0x24] sm:$0xe]  ;;  %v4028_v37 = vld [vmem:[%s3761_s11 + $0x58] sm:$0xf] }
  0x4a   : > { %v379_v0 = vrot.slane %v377_v51, 4  ;;  %v2837_v9 = vcombine.low %v352_v49, %v362_v59  ;;  %v385_v13 = vrot.slane %v383_v63, 5  ;;  %v1623_v17 = vsel %vm3955_vm7, %v2973_v54, %v1622_v25  ;;  %v4037_v54 = vld [vmem:[%s3761_s11 + $0x5c] sm:$0x1] }
  0x4b   : > { %v371_v10 = vrot.slane %v370_v16, 4  ;;  %v2982_v22 = vcombine.low %v1623_v17, %v1626_v2  ;;  %v390_v24 = vrot.slane %v388_v26, 4  ;;  %v391_v1 = vshll.u32 %v3974_v30, 16 }
  0x4c   : > { %v380_v20 = vor.u32 %v379_v0, %v375_v53  ;;  %3202 = vmatprep.mubr.msk.bf16.mxu1 %vm461_vm3, %v2837_v9  ;;  %v397_v35 = vshll.u32 %v3990_v62, 16  ;;  %v401_v60 = vshrl.u32 %v3990_v62, 16  ;;  %v407_v25 = vshll.u32 %v3994_v55, 16 }
  0x4d   : > { %v376_v33 = vsel %vm3800_vm4, %v371_v10, %v375_v53  ;;  %v393_v42 = vrot.slane %v391_v1, 5  ;;  %v2974_v45 = vrot.slane %v2966_v12, 9  ;;  %v1629_v43 = vrot.slane %v3869_v52, 5  ;;  %v2967_v10 = vld [vmem:[%s3761_s11 + $0x30] sm:$0xe] }
  0x4e   : > { %v381_v40 = vrot.slane %v380_v20, 4  ;;  %v399_v46 = vrot.slane %v397_v35, 5  ;;  %v403_v47 = vrot.slane %v401_v60, 4  ;;  %v409_v48 = vrot.slane %v407_v25, 5 }
  0x4f   : > { %v1632_v49 = vrot.slane %v3881_v61, 5  ;;  %3285 = vmatmul.mubr.msk.bf16.vlgmr.msra.gmra.mrb[0].mxu0 %vm461_vm3, %v2982_v22  ;;  %v394_v51 = vor.u32 %v393_v42, %v390_v24  ;;  %v1630_v16 = vsel %vm3955_vm7, %v2974_v45, %v1629_v43  ;;  %v1631_v53 = vrot.slane %v1629_v43, 4  ;;  %v4058_v42 = vld [vmem:[%s3761_s11 + $0x40] sm:$0xf]  ;;  %v4061_v45 = vld [vmem:[%s3761_s11 + $0x44] sm:$0x1] }
  0x50   : > { %v386_v15 = vsel %vm3800_vm4, %v381_v40, %v385_v13  ;;  %3301 = vmatpush3.bf16.msra.mxu0 %v3812_v41  ;;  %v404_v52 = vor.u32 %v403_v47, %v399_v46  ;;  %v412_v61 = vshrl.u32 %v4012_v28, 16  ;;  %v415_v59 = vshll.u32 %v4012_v28, 16 }
  0x51   : > { %v2838_v63 = vcombine.low %v376_v33, %v386_v15  ;;  %v395_v0 = vrot.slane %v394_v51, 4  ;;  %v1633_v2 = vsel %vm3955_vm7, %v1631_v53, %v1632_v49  ;;  %v421_v26 = vshll.u32 %v4028_v37, 16  ;;  %3492 = vmatprep.subr.msk.bf16.mxu0 %vm486_vm0, %v4023_v34  ;;  %v2968_v33 = vld [vmem:[%s3761_s11 + $0x3c] sm:$0xe] }
  0x52   : > { %v425_v9 = vshrl.u32 %v4028_v37, 16  ;;  %v405_v41 = vrot.slane %v404_v52, 4  ;;  %v2983_v13 = vcombine.low %v1630_v16, %v1633_v2  ;;  %v414_v17 = vrot.slane %v412_v61, 4  ;;  %v2969_v2 = vld [vmem:[%s3761_s11 + $0x48] sm:$0xe] }
  0x53   : > { %3203 = vmatmul.mubr.msk.bf16.gmra.mrb[8].mxu1 %vm461_vm3, %v2838_v63  ;;  %v417_v12 = vrot.slane %v415_v59, 5  ;;  %v400_v20 = vsel %vm3800_vm4, %v395_v0, %v399_v46  ;;  %v423_v22 = vrot.slane %v421_v26, 5  ;;  %v431_v1 = vshll.u32 %v4037_v54, 16  ;;  %v4076_v59 = vld [vmem:[%s3761_s11 + $0x4c] sm:$0xf] }
  0x54   : > { %v427_v24 = vrot.slane %v425_v9, 4  ;;  %v410_v35 = vsel %vm3800_vm4, %v405_v41, %v409_v48  ;;  %3288 = vmatprep.mubr.msk.bf16.mxu0 %vm461_vm3, %v2983_v13  ;;  %v2975_v25 = vrot.slane %v2967_v10, 9  ;;  %v1636_v40 = vrot.slane %v3911_v50, 5  ;;  %v4079_v0 = vld [vmem:[%s3761_s11 + $0x50] sm:$0x1] }
  0x55   : > { %v418_v60 = vor.u32 %v417_v12, %v414_v17  ;;  %v2839_v43 = vcombine.low %v400_v20, %v410_v35  ;;  %v433_v47 = vrot.slane %v431_v1, 5  ;;  %v1639_v49 = vrot.slane %v3921_v58, 5  ;;  %v4087_v17 = vld [vmem:[%s3761_s11 + $0x58] sm:$0xf]  ;;  %v4090_v12 = vld [vmem:[%s3761_s11 + $0x5c] sm:$0x1] }
  0x56   : > { %v428_v46 = vor.u32 %v427_v24, %v423_v22  ;;  %v1637_v48 = vsel %vm3955_vm7, %v2975_v25, %v1636_v40  ;;  %v1638_v51 = vrot.slane %v1636_v40, 4  ;;  %v2976_v16 = vrot.slane %v2968_v33, 9  ;;  %4711 = vst [vmem:[#allocation5_spill] sm:$0xff] %v4090_v12  ;;  %v4100_v35 = vld [vmem:[%s3761_s11 + $0x64] sm:$0xf] }
  0x57   : > { %v419_v15 = vrot.slane %v418_v60, 4  ;;  %3206 = vmatprep.mubr.msk.bf16.mxu1 %vm461_vm3, %v2839_v43  ;;  %v1643_v53 = vrot.slane %v4058_v42, 5  ;;  %v1646_v63 = vrot.slane %v4061_v45, 5  ;;  %v2849_v61 = vcombine.low %v3764_v6, %v3767_v7  ;;  %v2970_v6 = vld [vmem:[%s3761_s11 + $0x54] sm:$0xe]  ;;  %4712 = vst [vmem:[#allocation6_spill] sm:$0xff] %v4100_v35 }
  0x58   : > { %v429_v50 = vrot.slane %v428_v46, 4  ;;  %v1640_v58 = vsel %vm3955_vm7, %v1638_v51, %v1639_v49  ;;  %v1650_v24 = vrot.slane %v4076_v59, 5  ;;  %v1653_v1 = vrot.slane %v4079_v0, 5  ;;  %v4103_v60 = vld [vmem:[%s3761_s11 + $0x68] sm:$0x1] }
  0x59   : > { %v424_v52 = vsel %vm3800_vm4, %v419_v15, %v423_v22  ;;  %v2984_v9 = vcombine.low %v1637_v48, %v1640_v58  ;;  %v1644_v10 = vsel %vm3955_vm7, %v2976_v16, %v1643_v53  ;;  %v1645_v41 = vrot.slane %v1643_v53, 4  ;;  %4713 = vst [vmem:[#allocation7_spill] sm:$0xff] %v4103_v60 }
  0x5a   : > { %v434_v26 = vsel %vm3800_vm4, %v429_v50, %v433_v47  ;;  %v2977_v22 = vrot.slane %v2969_v2, 9  ;;  %v1652_v40 = vrot.slane %v1650_v24, 4  ;;  %v2978_v43 = vrot.slane %v2970_v6, 9  ;;  %v2971_v47 = vld [vmem:[%s3761_s11 + $0x60] sm:$0xe] }
  0x5b   : > { %v2840_v13 = vcombine.low %v424_v52, %v434_v26  ;;  %3289 = vmatmul.mubr.msk.bf16.gmra.mrb[4].mxu0 %vm461_vm3, %v2984_v9  ;;  %v1647_v20 = vsel %vm3955_vm7, %v1645_v41, %v1646_v63  ;;  %v1657_v46 = vrot.slane %v4087_v17, 5  ;;  %v787_v49 = vrot.slane %v3805_v36, 5  ;;  %v753_v2 = vld [vmem:[%s3761_s11 + $0x18] sm:$0xe]  ;;  %v4135_v6 = vld [vmem:[%s4697_s1 + $0x6] sm:$0x3] }
  0x5c   : > { %v2985_v33 = vcombine.low %v1644_v10, %v1647_v20  ;;  %v1651_v25 = vsel %vm3955_vm7, %v2977_v22, %v1650_v24  ;;  %v1660_v15 = vrot.slane %v4090_v12, 5  ;;  %v1654_v48 = vsel %vm3955_vm7, %v1652_v40, %v1653_v1  ;;  %v755_v1 = vld [vmem:[%s3761_s11 + $0x30] sm:$0xe] }
  0x5d   : > { %3207 = vmatmul.mubr.msk.bf16.gmra.mrb[12].mxu1 %vm461_vm3, %v2840_v13  ;;  %v1658_v51 = vsel %vm3955_vm7, %v2978_v43, %v1657_v46  ;;  %v1659_v16 = vrot.slane %v1657_v46, 4  ;;  %v1664_v50 = vrot.slane %v4100_v35, 5  ;;  %v2850_v53 = vcombine.low %v3796_v31, %v3805_v36  ;;  %v754_v36 = vld [vmem:[%s3761_s11 + $0x24] sm:$0xe]  ;;  %v4409_v12 = vld [vmem:[%s3761_s11 + $0x70] sm:$0xf] }
  0x5e   : > { %3212 = vmatprep.mubr.msk.bf16.mxu1 %vm461_vm3, %v2849_v61  ;;  %3292 = vmatprep.mubr.msk.bf16.mxu0 %vm461_vm3, %v2985_v33  ;;  %v2986_v63 = vcombine.low %v1651_v25, %v1654_v48  ;;  %v2979_v52 = vrot.slane %v2971_v47, 9  ;;  %v1667_v58 = vrot.slane %v4103_v60, 5  ;;  %v752_v61 = vld [vmem:[%s3761_s11 + $0xc] sm:$0xe]  ;;  %v790_v26 = vrot.slane %v3815_v44, 5 }
  0x5f   : > { %v2851_v9 = vcombine.low %v3844_v21, %v3851_v27  ;;  %v1661_v10 = vsel %vm3955_vm7, %v1659_v16, %v1660_v15  ;;  %v1666_v41 = vrot.slane %v1664_v50, 4  ;;  %v885_v13 = vsel %vm486_vm0, %v3875_v57, 0  ;;  %v3557_v16 = vld [vmem:[%s3761_s11 + $0x18] sm:$0xff]   ;;  %v4381_v60 = vld [vmem:[%s3761_s11 + $0x64] sm:$0xf] }
  0x60   : > { %v2987_v31 = vcombine.low %v1658_v51, %v1661_v10  ;;  %v2866_v44 = vrot.slane %v752_v61, 9  ;;  %v789_v20 = vrot.slane %v787_v49, 4  ;;  %v2867_v21 = vrot.slane %v753_v2, 9  ;;  %4714 = vst [vmem:[#allocation8_spill] sm:$0xff] %v4381_v60 }
  0x61   : > { %v1665_v22 = vsel %vm3955_vm7, %v2979_v52, %v1664_v50  ;;  %v1668_v57 = vsel %vm3955_vm7, %v1666_v41, %v1667_v58  ;;  %v794_v24 = vrot.slane %v3851_v27, 5  ;;  %v797_v40 = vrot.slane %v3859_v38, 5 }
  0x62   : > { %v4148_v33 = vsel %vm3955_vm7, %v2866_v44, %v787_v49  ;;  %v4152_v25 = vsel %vm3955_vm7, %v789_v20, %v790_v26  ;;  %v2868_v43 = vrot.slane %v754_v36, 9  ;;  %v2988_v49 = vcombine.low %v1665_v22, %v1668_v57  ;;  %v3030_v26 = vld [vmem:[%s3761_s11 + $0x18] sm:$0xf]  ;;  %v3559_v57 = vld [vmem:[%s3761_s11 + $0x24] sm:$0xff]  }
  0x63   : > { %3293 = vmatmul.mubr.msk.bf16.gmra.mrb[8].mxu0 %vm461_vm3, %v2986_v63  ;;  %v2875_v27 = vcombine.low %v4148_v33, %v4152_v25  ;;  %v4161_v46 = vsel %vm3955_vm7, %v2867_v21, %v794_v24  ;;  %v796_v47 = vrot.slane %v794_v24, 4  ;;  %v801_v15 = vrot.slane %v3891_v19, 5 }
  0x64   : > { %3296 = vmatprep.mubr.msk.bf16.mxu0 %vm461_vm3, %v2987_v31  ;;  %v804_v48 = vrot.slane %v3901_v29, 5  ;;  %v2869_v38 = vrot.slane %v755_v1, 9  ;;  %v2852_v51 = vcombine.low %v3888_v11, %v3891_v19  ;;  %v811_v63 = vrot.slane %v3937_v39, 5  ;;  %v756_v19 = vld [vmem:[%s3761_s11 + $0x3c] sm:$0xe] }
  0x65   : > { %3213 = vmatmul.mubr.msk.bf16.vlgmr.msra.gmra.mrb[0].mxu1 %vm461_vm3, %v2850_v53  ;;  %v4170_v50 = vsel %vm3955_vm7, %v796_v47, %v797_v40  ;;  %v808_v53 = vrot.slane %v3932_v23, 5  ;;  %v2853_v52 = vcombine.low %v3926_v14, %v3932_v23  ;;  %v4180_v58 = vsel %vm3955_vm7, %v2868_v43, %v801_v15  ;;  %v751_v14 = vld [vmem:[%s3761_s11] sm:$0xe]  ;;  %v4208_v31 = vld [vmem:[%s3761_s11 + $0x1c] sm:$0xf] }
  0x66   : > { %3229 = vmatpush3.bf16.msra.mxu1 %v885_v13  ;;  %3216 = vmatprep.mubr.msk.bf16.mxu1 %vm461_vm3, %v2851_v9  ;;  %v2876_v29 = vcombine.low %v4161_v46, %v4170_v50  ;;  %v803_v11 = vrot.slane %v801_v15, 4  ;;  %v780_v61 = vrot.slane %v3767_v7, 5  ;;  %v2870_v10 = vrot.slane %v756_v19, 9  ;;  %v757_v1 = vld [vmem:[%s3761_s11 + $0x48] sm:$0xe] }
  0x67   : > { %3487 = vmatprep.subr.msk.bf16.mxu1 %vm486_vm0, %v4135_v6  ;;  %v4186_v2 = vsel %vm3955_vm7, %v2869_v38, %v808_v53  ;;  %v810_v39 = vrot.slane %v808_v53, 4  ;;  %v783_v41 = vrot.slane %v3770_v8, 5  ;;  %v2865_v36 = vrot.slane %v751_v14, 9  ;;  %v4234_v38 = vld [vmem:[%s4697_s1 + $0x10] sm:$0x3] }
  0x68   : > { %v4192_v23 = vsel %vm3955_vm7, %v803_v11, %v804_v48  ;;  %v782_v44 = vrot.slane %v780_v61, 4  ;;  %v815_v20 = vrot.slane %v3960_v4, 5  ;;  %v818_v21 = vrot.slane %v3963_v18, 5  ;;  %v4255_v14 = vld [vmem:[%s3761_s11 + $0x28] sm:$0xf] }
  0x69   : > { %v4201_v9 = vsel %vm3955_vm7, %v810_v39, %v811_v63  ;;  %v2854_v22 = vcombine.low %v3949_v56, %v3960_v4  ;;  %v2059_v24 = vshrl.u32 %v3030_v26, 16  ;;  %v2062_v8 = vshll.u32 %v3030_v26, 16  ;;  %v3561_v4 = vld [vmem:[%s3761_s11 + $0x30] sm:$0xff]   ;;  %v4357_v46 = vld [vmem:[%s3761_s11 + $0x44] sm:$0x1] }
  0x6a   : > { %v2068_v40 = vshll.u32 %v4208_v31, 16  ;;  %v2072_v43 = vshrl.u32 %v4208_v31, 16  ;;  %v4220_v47 = vsel %vm3955_vm7, %v2870_v10, %v815_v20  ;;  %v2301_v18 = vsel %vm486_vm0, %v4023_v34, 0  ;;  %v3048_v7 = vld [vmem:[%s3761_s11 + $0x60] sm:$0xf] }
  0x6b   : > { %3297 = vmatmul.mubr.msk.bf16.gmra.mrb[12].mxu0 %vm461_vm3, %v2988_v49  ;;  %v817_v49 = vrot.slane %v815_v20, 4  ;;  %v2855_v56 = vcombine.low %v3974_v30, %v3990_v62  ;;  %v781_v15 = vsel %vm3955_vm7, %v2865_v36, %v780_v61  ;;  %v784_v48 = vsel %vm3955_vm7, %v782_v44, %v783_v41  ;;  %v4242_v30 = vld [vmem:[%s3761_s11 + $0x20] sm:$0x1]  ;;  %v3033_v61 = vld [vmem:[%s3761_s11 + $0x24] sm:$0xf] }
  0x6c   : > { %3302 = vmatprep.mubr.msk.bf16.mxu0 %vm461_vm3, %v3557_v16  ;;  %v2871_v34 = vrot.slane %v757_v1, 9  ;;  %v2061_v16 = vrot.slane %v2059_v24, 4  ;;  %v2064_v53 = vrot.slane %v2062_v8, 5  ;;  %v4248_v11 = vrot.slane %v2068_v40, 5  ;;  %v758_v44 = vld [vmem:[%s3761_s11 + $0x54] sm:$0xe] }
  0x6d   : > { %3217 = vmatmul.mubr.msk.bf16.gmra.mrb[4].mxu1 %vm461_vm3, %v2852_v51  ;;  %v4238_v51 = vsel %vm3955_vm7, %v817_v49, %v818_v21  ;;  %v2074_v19 = vrot.slane %v2072_v43, 4  ;;  %v825_v39 = vrot.slane %v3994_v55, 5  ;;  %v2856_v10 = vcombine.low %v4012_v28, %v4028_v37  ;;  %v3036_v55 = vld [vmem:[%s3761_s11 + $0x30] sm:$0xf]  ;;  %v3563_v20 = vld [vmem:[%s3761_s11 + $0x3c] sm:$0xff]   ;;  %v3564_v1 = vld [vmem:[%s3761_s11 + $0x48] sm:$0xff]  }
  0x6e   : > { %3220 = vmatprep.mubr.msk.bf16.mxu1 %vm461_vm3, %v2853_v52  ;;  %v822_v52 = vrot.slane %v3990_v62, 5  ;;  %v2874_v41 = vcombine.low %v781_v15, %v784_v48  ;;  %v2078_v36 = vshll.u32 %v4242_v30, 16  ;;  %v2065_v21 = vor.u32 %v2064_v53, %v2061_v16  ;;  %v4274_v8 = vld [vmem:[%s3761_s11 + $0x34] sm:$0xf] }
  0x6f   : > { %v2075_v28 = vor.u32 %v2074_v19, %v4248_v11  ;;  %v2092_v40 = vshll.u32 %v4255_v14, 16  ;;  %v2096_v43 = vshrl.u32 %v4255_v14, 16  ;;  %v829_v15 = vrot.slane %v4028_v37, 5 }
  0x70   : > { %v4259_v62 = vsel %vm3955_vm7, %v2871_v34, %v822_v52  ;;  %v824_v26 = vrot.slane %v822_v52, 4  ;;  %v2116_v48 = vshll.u32 %v4274_v8, 16  ;;  %v2120_v34 = vshrl.u32 %v4274_v8, 16 }
  0x71   : > { %v832_v16 = vrot.slane %v4037_v54, 5  ;;  %v2066_v53 = vrot.slane %v2065_v21, 4  ;;  %v2080_v52 = vrot.slane %v2078_v36, 5  ;;  %v2076_v37 = vrot.slane %v2075_v28, 4  ;;  %v4297_v36 = vld [vmem:[%s3761_s11 + $0x2c] sm:$0x1] }
  0x72   : > { %v4271_v24 = vsel %vm3955_vm7, %v824_v26, %v825_v39  ;;  %v4293_v26 = vrot.slane %v2092_v40, 5  ;;  %v4304_v21 = vld [vmem:[%s3761_s11 + $0x38] sm:$0x1]  ;;  %v1084_v28 = vsel %vm486_vm0, %v4135_v6, 0 }
  0x73   : > { %3303 = vmatmul.mubr.msk.bf16.vlgmr.msra.gmra.mrb[0].mxu0 %vm461_vm3, %v3559_v57  ;;  %v2086_v57 = vshll.u32 %v3033_v61, 16  ;;  %v3565_v40 = vld [vmem:[%s3761_s11 + $0x54] sm:$0xff]  }
  0x74   : > { %3319 = vmatpush3.bf16.msra.mxu0 %v2301_v18  ;;  %3306 = vmatprep.mubr.msk.bf16.mxu0 %vm461_vm3, %v3561_v4  ;;  %v2107_v18 = vshrl.u32 %v3036_v55, 16  ;;  %v2872_v4 = vrot.slane %v758_v44, 9 }
  0x75   : > { %3221 = vmatmul.mubr.msk.bf16.gmra.mrb[8].mxu1 %vm461_vm3, %v2854_v22  ;;  %3493 = vmatprep.subr.msk.bf16.mxu0 %vm486_vm0, %v4234_v38  ;;  %v2083_v22 = vshrl.u32 %v3033_v61, 16  ;;  %v831_v61 = vrot.slane %v829_v15, 4  ;;  %v2088_v54 = vrot.slane %v2086_v57, 5  ;;  %v2122_v57 = vrot.slane %v2120_v34, 4  ;;  %v3042_v34 = vld [vmem:[%s3761_s11 + $0x48] sm:$0xf] }
  0x76   : > { %3224 = vmatprep.mubr.msk.bf16.mxu1 %vm461_vm3, %v2855_v56  ;;  %v2110_v56 = vshll.u32 %v3036_v55, 16  ;;  %v4289_v19 = vsel %vm3955_vm7, %v2872_v4, %v829_v15  ;;  %v2098_v55 = vrot.slane %v2096_v43, 4  ;;  %v2109_v44 = vrot.slane %v2107_v18, 4  ;;  %v4315_v43 = vld [vmem:[%s3761_s11 + $0x40] sm:$0xf] }
  0x77   : > { %v2085_v39 = vrot.slane %v2083_v22, 4  ;;  %v4306_v22 = vrot.slane %v2116_v48, 5  ;;  %v3566_v18 = vld [vmem:[%s3761_s11 + $0x60] sm:$0xff]   ;;  %v2081_v4 = vsel %vm3800_vm4, %v2076_v37, %v2080_v52  ;;  %v2102_v48 = vshll.u32 %v4297_v36, 16 }
  0x78   : > { %v2155_v52 = vshrl.u32 %v3042_v34, 16  ;;  %v2158_v37 = vshll.u32 %v3042_v34, 16 }
  0x79   : > { %v2089_v15 = vor.u32 %v2088_v54, %v2085_v39  ;;  %v2123_v63 = vor.u32 %v2122_v57, %v4306_v22  ;;  %v3045_v57 = vld [vmem:[%s3761_s11 + $0x54] sm:$0xf] }
  0x7a   : > { %v2157_v50 = vrot.slane %v2155_v52, 4  ;;  %v2182_v34 = vshll.u32 %v3045_v57, 16 }
  0x7b   : > { %3307 = vmatmul.mubr.msk.bf16.gmra.mrb[4].mxu0 %vm461_vm3, %v3563_v20  ;;  %v2112_v20 = vrot.slane %v2110_v56, 5  ;;  %v2071_v56 = vsel %vm3800_vm4, %v2066_v53, %v4248_v11  ;;  %v2140_v11 = vshll.u32 %v4315_v43, 16  ;;  %v2144_v53 = vshrl.u32 %v4315_v43, 16 }
  0x7c   : > { %3310 = vmatprep.mubr.msk.bf16.mxu0 %vm461_vm3, %v3564_v1  ;;  %v2126_v1 = vshll.u32 %v4304_v21, 16  ;;  %v3055_v54 = vcombine.low %v2071_v56, %v2081_v4  ;;  %v2124_v56 = vrot.slane %v2123_v63, 4  ;;  %v4362_v63 = vld [vmem:[%s3761_s11 + $0x50] sm:$0x1] }
  0x7d   : > { %3225 = vmatmul.mubr.msk.bf16.gmra.mrb[12].mxu1 %vm461_vm3, %v2856_v10  ;;  %v4301_v10 = vsel %vm3955_vm7, %v831_v61, %v832_v16  ;;  %v4326_v16 = vld [vmem:[%s3761_s11 + $0x4c] sm:$0xf]  ;;  %v2099_v61 = vor.u32 %v2098_v55, %v4293_v26  ;;  %v2113_v6 = vor.u32 %v2112_v20, %v2109_v44  ;;  %v2090_v55 = vrot.slane %v2089_v15, 4 }
  0x7e   : > { %3230 = vmatprep.mubr.msk.bf16.mxu1 %vm461_vm3, %v2874_v41  ;;  %v3039_v41 = vld [vmem:[%s3761_s11 + $0x3c] sm:$0xf]  ;;  %v2164_v39 = vshll.u32 %v4326_v16, 16  ;;  %v2104_v44 = vrot.slane %v2102_v48, 5  ;;  %v2168_v20 = vshrl.u32 %v4326_v16, 16  ;;  %v2128_v33 = vrot.slane %v2126_v1, 5 }
  0x7f   : > { %v2131_v49 = vshrl.u32 %v3039_v41, 16  ;;  %v2134_v13 = vshll.u32 %v3039_v41, 16  ;;  %v2100_v41 = vrot.slane %v2099_v61, 4  ;;  %v4350_v15 = vrot.slane %v2140_v11, 5 }
  0x80   : > { %v2146_v48 = vrot.slane %v2144_v53, 4  ;;  %v2179_v1 = vshrl.u32 %v3045_v57, 16  ;;  %v1353_v11 = vshll.u32 %v4076_v59, 16  ;;  %v2095_v53 = vsel %vm3800_vm4, %v2090_v55, %v4293_v26 }
  0x81   : > { %v2133_v25 = vrot.slane %v2131_v49, 4  ;;  %v2136_v4 = vrot.slane %v2134_v13, 5  ;;  %v4359_v49 = vrot.slane %v2164_v39, 5  ;;  %v2170_v13 = vrot.slane %v2168_v20, 4 }
  0x82   : > { %v2105_v52 = vsel %vm3800_vm4, %v2100_v41, %v2104_v44  ;;  %v2147_v57 = vor.u32 %v2146_v48, %v4350_v15  ;;  %v2129_v26 = vsel %vm3800_vm4, %v2124_v56, %v2128_v33  ;;  %v2181_v44 = vrot.slane %v2179_v1, 4  ;;  %v4400_v56 = vld [vmem:[%s3761_s11 + $0x5c] sm:$0x1] }
  0x83   : > { %3311 = vmatmul.mubr.msk.bf16.gmra.mrb[8].mxu0 %vm461_vm3, %v3565_v40  ;;  %v2114_v40 = vrot.slane %v2113_v6, 4  ;;  %v2137_v20 = vor.u32 %v2136_v4, %v2133_v25  ;;  %v2171_v41 = vor.u32 %v2170_v13, %v4359_v49  ;;  %v4716_v33 = vcombine.low %v4186_v2, %v4201_v9 }
  0x84   : > { %3314 = vmatprep.mubr.msk.bf16.mxu0 %vm461_vm3, %v3566_v18  ;;  %v3567_v18 = vld [vmem:[%s3761_s11 + $0x6c] sm:$0xff]   ;;  %v2203_v4 = vshrl.u32 %v3048_v7, 16  ;;  %v1357_v48 = vshrl.u32 %v4076_v59, 16  ;;  %v3056_v13 = vcombine.low %v2095_v53, %v2105_v52 }
  0x85   : > { %3231 = vmatmul.mubr.msk.bf16.vlgmr.msra.gmra.mrb[0].mxu1 %vm461_vm3, %v2875_v27  ;;  %v4347_v27 = vld [vmem:[%s3761_s11 + $0x58] sm:$0xf]  ;;  %v2119_v39 = vsel %vm3800_vm4, %v2114_v40, %v4306_v22  ;;  %v4715_v22 = vcombine.low %v4180_v58, %v4192_v23  ;;  %v2184_v40 = vrot.slane %v2182_v34, 5  ;;  %v2206_v58 = vshll.u32 %v3048_v7, 16 }
  0x86   : > { %3247 = vmatpush3.bf16.msra.mxu1 %v1084_v28  ;;  %3234 = vmatprep.mubr.msk.bf16.mxu1 %vm461_vm3, %v2876_v29  ;;  %v3576_v28 = vld [vmem:[%s4697_s1 + $0x8] sm:$0x3]  ;;  %v2160_v29 = vrot.slane %v2158_v37, 5  ;;  %v2188_v61 = vshll.u32 %v4347_v27, 16  ;;  %v2192_v6 = vshrl.u32 %v4347_v27, 16  ;;  %v2555_v37 = vsel %vm486_vm0, %v4234_v38, 0 }
  0x87   : > { %3489 = vmatprep.subr.msk.bf16.mxu1 %vm486_vm0, %v3576_v28  ;;  %v2150_v28 = vshll.u32 %v4357_v46, 16  ;;  %v2174_v38 = vshll.u32 %v4362_v63, 16  ;;  %v2212_v23 = vshll.u32 %v4381_v60, 16  ;;  %v3057_v34 = vcombine.low %v2119_v39, %v2129_v26 }
  0x88   : > { %v2161_v55 = vor.u32 %v2160_v29, %v2157_v50  ;;  %v4393_v25 = vrot.slane %v2188_v61, 5  ;;  %v2138_v50 = vrot.slane %v2137_v20, 4  ;;  %v2148_v29 = vrot.slane %v2147_v57, 4 }
  0x89   : > { %v2152_v1 = vrot.slane %v2150_v28, 5  ;;  %v2176_v9 = vrot.slane %v2174_v38, 5  ;;  %v2172_v61 = vrot.slane %v2171_v41, 4  ;;  %v2198_v7 = vshll.u32 %v4400_v56, 16  ;;  %v4421_v28 = vld [vmem:[%s3761_s11 + $0x68] sm:$0x1] }
  0x8a   : > { %v2162_v2 = vrot.slane %v2161_v55, 4  ;;  %v2205_v35 = vrot.slane %v2203_v4, 4  ;;  %v4411_v59 = vrot.slane %v2212_v23, 5  ;;  %v4413_v57 = vrot.slane %v1353_v11, 5 }
  0x8b   : > { %3315 = vmatmul.mubr.msk.bf16.gmra.mrb[12].mxu0 %vm461_vm3, %v3567_v18  ;;  %v2194_v18 = vrot.slane %v2192_v6, 4  ;;  %v2185_v6 = vor.u32 %v2184_v40, %v2181_v44  ;;  %v1359_v53 = vrot.slane %v1357_v48, 4  ;;  %v2143_v52 = vsel %vm3800_vm4, %v2138_v50, %v4350_v15 }
  0x8c   : > { %3320 = vmatprep.mubr.msk.bf16.mxu0 %vm461_vm3, %v3055_v54  ;;  %v2216_v54 = vshrl.u32 %v4381_v60, 16  ;;  %v2208_v60 = vrot.slane %v2206_v58, 5  ;;  %v2153_v39 = vsel %vm3800_vm4, %v2148_v29, %v2152_v1  ;;  %v2236_v38 = vshll.u32 %v4409_v12, 16  ;;  %v3568_v1 = vld [vmem:[%s3761_s11 + $0xc] sm:$0xff]  }
  0x8d   : > { %3235 = vmatmul.mubr.msk.bf16.gmra.mrb[4].mxu1 %vm461_vm3, %v4715_v22  ;;  %v2195_v22 = vor.u32 %v2194_v18, %v4393_v25  ;;  %v2240_v44 = vshrl.u32 %v4409_v12, 16  ;;  %v4717_v11 = vcombine.low %v4220_v47, %v4238_v51  ;;  %v2167_v15 = vsel %vm3800_vm4, %v2162_v2, %v4359_v49 }
  0x8e   : > { %3238 = vmatprep.mubr.msk.bf16.mxu1 %vm461_vm3, %v4716_v33  ;;  %v3051_v33 = vld [vmem:[%s3761_s11 + $0x6c] sm:$0xf]  ;;  %v2218_v20 = vrot.slane %v2216_v54, 4  ;;  %v2177_v41 = vsel %vm3800_vm4, %v2172_v61, %v2176_v9  ;;  %v2186_v40 = vrot.slane %v2185_v6, 4  ;;  %v2200_v18 = vrot.slane %v2198_v7, 5 }
  0x8f   : > { %v2227_v26 = vshrl.u32 %v3051_v33, 16  ;;  %v2230_v55 = vshll.u32 %v3051_v33, 16  ;;  %v4718_v4 = vcombine.low %v4259_v62, %v4271_v24  ;;  %v2196_v47 = vrot.slane %v2195_v22, 4  ;;  %v2938_v22 = vld [vmem:[%s3761_s11 + $0x48] sm:$0xf] }
  0x90   : > { %v2209_v51 = vor.u32 %v2208_v60, %v2205_v35  ;;  %v2222_v49 = vshll.u32 %v4421_v28, 16  ;;  %v1360_v58 = vor.u32 %v1359_v53, %v4413_v57  ;;  %v1363_v23 = vshll.u32 %v4079_v0, 16  ;;  %v4450_v60 = vld [vmem:[%s3761_s11 + $0x74] sm:$0x1] }
  0x91   : > { %v3058_v54 = vcombine.low %v2143_v52, %v2153_v39  ;;  %v2229_v48 = vrot.slane %v2227_v26, 4  ;;  %v2232_v62 = vrot.slane %v2230_v55, 5  ;;  %v4444_v24 = vrot.slane %v2236_v38, 5 }
  0x92   : > { %v2242_v50 = vrot.slane %v2240_v44, 4  ;;  %v3059_v29 = vcombine.low %v2167_v15, %v2177_v41  ;;  %v2191_v35 = vsel %vm3800_vm4, %v2186_v40, %v4393_v25  ;;  %v2210_v0 = vrot.slane %v2209_v51, 4  ;;  %v3570_v51 = vld [vmem:[%s3761_s11 + $0x24] sm:$0xff]  }
  0x93   : > { %3321 = vmatmul.mubr.msk.bf16.vlgmr.msra.gmra.mrb[0].mxu0 %vm461_vm3, %v3056_v13  ;;  %v2201_v13 = vsel %vm3800_vm4, %v2196_v47, %v2200_v18  ;;  %v2224_v2 = vrot.slane %v2222_v49, 5  ;;  %v1361_v9 = vrot.slane %v1360_v58, 4  ;;  %v1365_v61 = vrot.slane %v1363_v23, 5 }
  0x94   : > { %3337 = vmatpush3.bf16.msra.mxu0 %v2555_v37  ;;  %3324 = vmatprep.mubr.msk.bf16.mxu0 %vm461_vm3, %v3057_v34  ;;  %v2219_v37 = vor.u32 %v2218_v20, %v4411_v59  ;;  %v2450_v6 = vrot.slane %v4208_v31, 5  ;;  %v2233_v7 = vor.u32 %v2232_v62, %v2229_v48  ;;  %v2243_v33 = vor.u32 %v2242_v50, %v4444_v24  ;;  %v3071_v20 = vld [vmem:[%s3761_s11 + $0x18] sm:$0xe]  ;;  %v3073_v62 = vld [vmem:[%s3761_s11 + $0x30] sm:$0xe] }
  0x95   : > { %3239 = vmatmul.mubr.msk.bf16.gmra.mrb[8].mxu1 %vm461_vm3, %v4717_v11  ;;  %v2246_v25 = vshll.u32 %v4450_v60, 16  ;;  %v4719_v53 = vcombine.low %v4289_v19, %v4301_v10  ;;  %v3060_v52 = vcombine.low %v2191_v35, %v2201_v13  ;;  %v2215_v31 = vsel %vm3800_vm4, %v2210_v0, %v4411_v59  ;;  %v3569_v59 = vld [vmem:[%s3761_s11 + $0x18] sm:$0xff]  }
  0x96   : > { %3242 = vmatprep.mubr.msk.bf16.mxu1 %vm461_vm3, %v4718_v4  ;;  %v2220_v34 = vrot.slane %v2219_v37, 4  ;;  %v1344_v26 = vshrl.u32 %v2938_v22, 16  ;;  %v1347_v55 = vshll.u32 %v2938_v22, 16  ;;  %v3079_v19 = vrot.slane %v3071_v20, 9  ;;  %v2935_v4 = vld [vmem:[%s3761_s11 + $0x3c] sm:$0xf] }
  0x97   : > { %v2452_v10 = vrot.slane %v2450_v6, 4  ;;  %v2453_v38 = vrot.slane %v4242_v30, 5  ;;  %v1366_v44 = vsel %vm3800_vm4, %v1361_v9, %v1365_v61  ;;  %v2234_v11 = vrot.slane %v2233_v7, 4  ;;  %v3072_v30 = vld [vmem:[%s3761_s11 + $0x24] sm:$0xe]  ;;  %v3571_v22 = vld [vmem:[%s3761_s11 + $0x30] sm:$0xff]  }
  0x98   : > { %v2225_v39 = vsel %vm3800_vm4, %v2220_v34, %v2224_v2  ;;  %v2244_v15 = vrot.slane %v2243_v33, 4  ;;  %v2248_v41 = vrot.slane %v2246_v25, 5  ;;  %v1346_v40 = vrot.slane %v1344_v26, 4  ;;  %v3572_v20 = vld [vmem:[%s3761_s11 + $0x3c] sm:$0xff]   ;;  %v2941_v26 = vld [vmem:[%s3761_s11 + $0x54] sm:$0xf] }
  0x99   : > { %v3061_v18 = vcombine.low %v2215_v31, %v2225_v39  ;;  %v1349_v47 = vrot.slane %v1347_v55, 5  ;;  %v2451_v37 = vsel %vm3955_vm7, %v3079_v19, %v2450_v6  ;;  %v2454_v49 = vsel %vm3955_vm7, %v2452_v10, %v2453_v38  ;;  %v3075_v38 = vld [vmem:[%s3761_s11 + $0x48] sm:$0xe] }
  0x9a   : > { %v2457_v58 = vrot.slane %v4255_v14, 5  ;;  %v2249_v48 = vsel %vm3800_vm4, %v2244_v15, %v2248_v41  ;;  %v2464_v50 = vrot.slane %v4274_v8, 5  ;;  %v1323_v35 = vshll.u32 %v2935_v4, 16 }
  0x9b   : > { %3325 = vmatmul.mubr.msk.bf16.gmra.mrb[4].mxu0 %vm461_vm3, %v3058_v54  ;;  %v1350_v23 = vor.u32 %v1349_v47, %v1346_v40  ;;  %v2239_v54 = vsel %vm3800_vm4, %v2234_v11, %v4444_v24  ;;  %v1329_v14 = vshll.u32 %v4058_v42, 16  ;;  %v3080_v24 = vrot.slane %v3072_v30, 9 }
  0x9c   : > { %3328 = vmatprep.mubr.msk.bf16.mxu0 %vm461_vm3, %v3059_v29  ;;  %v1320_v29 = vshrl.u32 %v2935_v4, 16  ;;  %v2460_v8 = vrot.slane %v4297_v36, 5  ;;  %v3088_v0 = vcombine.low %v2451_v37, %v2454_v49  ;;  %v2459_v34 = vrot.slane %v2457_v58, 4  ;;  %v3573_v37 = vld [vmem:[%s3761_s11 + $0x48] sm:$0xff]  }
  0x9d   : > { %3243 = vmatmul.mubr.msk.bf16.gmra.mrb[12].mxu1 %vm461_vm3, %v4719_v53  ;;  %v1351_v13 = vrot.slane %v1350_v23, 4  ;;  %v3081_v2 = vrot.slane %v3073_v62, 9  ;;  %v3062_v61 = vcombine.low %v2239_v54, %v2249_v48  ;;  %v2466_v6 = vrot.slane %v2464_v50, 4  ;;  %v3574_v23 = vld [vmem:[%s3761_s11 + $0x54] sm:$0xff]  }
  0x9e   : > { %3248 = vmatprep.mubr.msk.bf16.mxu1 %vm461_vm3, %v3568_v1  ;;  %v1333_v1 = vshrl.u32 %v4058_v42, 16  ;;  %v2467_v42 = vrot.slane %v4304_v21, 5  ;;  %v1322_v7 = vrot.slane %v1320_v29, 4  ;;  %v1325_v33 = vrot.slane %v1323_v35, 5 }
  0x9f   : > { %v1356_v9 = vsel %vm3800_vm4, %v1351_v13, %v4413_v57  ;;  %v4506_v25 = vrot.slane %v1329_v14, 5  ;;  %v2458_v53 = vsel %vm3955_vm7, %v3080_v24, %v2457_v58  ;;  %v2461_v57 = vsel %vm3955_vm7, %v2459_v34, %v2460_v8  ;;  %v3076_v24 = vld [vmem:[%s3761_s11 + $0x54] sm:$0xe]  ;;  %v4720_v8 = vld [vmem:[#allocation8_spill] sm:$0xff] }
  0xa0   : > { %v1335_v36 = vrot.slane %v1333_v1, 4  ;;  %v2465_v21 = vsel %vm3955_vm7, %v3081_v2, %v2464_v50  ;;  %v2471_v31 = vrot.slane %v4315_v43, 5  ;;  %v1339_v39 = vshll.u32 %v4061_v45, 16  ;;  %v2944_v50 = vld [vmem:[%s3761_s11 + $0x60] sm:$0xf] }
  0xa1   : > { %v2468_v55 = vsel %vm3955_vm7, %v2466_v6, %v2467_v42  ;;  %v1326_v19 = vor.u32 %v1325_v33, %v1322_v7  ;;  %v3089_v43 = vcombine.low %v2458_v53, %v2461_v57  ;;  %v2474_v11 = vrot.slane %v4357_v46, 5  ;;  %v4722_v33 = vld [vmem:[#allocation5_spill] sm:$0xff] }
  0xa2   : > { %v1336_v10 = vor.u32 %v1335_v36, %v4506_v25  ;;  %v1368_v15 = vshrl.u32 %v2941_v26, 16  ;;  %v1371_v41 = vshll.u32 %v2941_v26, 16  ;;  %v1377_v40 = vshll.u32 %v4087_v17, 16 }
  0xa3   : > { %3329 = vmatmul.mubr.msk.bf16.gmra.mrb[8].mxu0 %vm461_vm3, %v3060_v52  ;;  %v3074_v52 = vld [vmem:[%s3761_s11 + $0x3c] sm:$0xe]  ;;  %v2473_v4 = vrot.slane %v2471_v31, 4  ;;  %v1341_v47 = vrot.slane %v1339_v39, 5  ;;  %v2481_v58 = vrot.slane %v4362_v63, 5  ;;  %v2485_v63 = vrot.slane %v4347_v27, 5 }
  0xa4   : > { %3332 = vmatprep.mubr.msk.bf16.mxu0 %vm461_vm3, %v3061_v18  ;;  %v3082_v45 = vrot.slane %v3074_v52, 9  ;;  %v3090_v18 = vcombine.low %v2465_v21, %v2468_v55  ;;  %v1337_v49 = vrot.slane %v1336_v10, 4  ;;  %v1370_v46 = vrot.slane %v1368_v15, 4  ;;  %v3077_v27 = vld [vmem:[%s3761_s11 + $0x60] sm:$0xe] }
  0xa5   : > { %3249 = vmatmul.mubr.msk.bf16.vlgmr.msra.gmra.mrb[0].mxu1 %vm461_vm3, %v3569_v59  ;;  %v1381_v59 = vshrl.u32 %v4087_v17, 16  ;;  %v1373_v54 = vrot.slane %v1371_v41, 5  ;;  %v1379_v48 = vrot.slane %v1377_v40, 5  ;;  %v2475_v29 = vsel %vm3955_vm7, %v2473_v4, %v2474_v11  ;;  %v3575_v52 = vld [vmem:[%s3761_s11 + $0x60] sm:$0xff]  }
  0xa6   : > { %3355 = vmatpush3.bf16.msra.mxu1 %v3746_v3  ;;  %3252 = vmatprep.mubr.msk.bf16.mxu1 %vm461_vm3, %v3570_v51  ;;  %v4503_v3 = vcombine.low %v1356_v9, %v1366_v44  ;;  %v2478_v44 = vrot.slane %v4326_v16, 5  ;;  %v3083_v51 = vrot.slane %v3075_v38, 9  ;;  %v1327_v16 = vrot.slane %v1326_v19, 4  ;;  %v4721_v9 = vld [vmem:[#allocation6_spill] sm:$0xff] }
  0xa7   : > { %v1383_v62 = vrot.slane %v1381_v59, 4  ;;  %v2472_v17 = vsel %vm3955_vm7, %v3082_v45, %v2471_v31  ;;  %v1342_v1 = vsel %vm3800_vm4, %v1337_v49, %v1341_v47  ;;  %v1392_v34 = vshrl.u32 %v2944_v50, 16  ;;  %v3078_v47 = vld [vmem:[%s3761_s11 + $0x6c] sm:$0xe]  ;;  %s4607_s11 = scalar_lea.vmem [#allocation2], %s2830_s8 }
  0xa8   : > { %v2480_v30 = vrot.slane %v2478_v44, 4  ;;  %v2479_v35 = vsel %vm3955_vm7, %v3083_v51, %v2478_v44  ;;  %v1332_v14 = vsel %vm3800_vm4, %v1327_v16, %v4506_v25  ;;  %v1395_v2 = vshll.u32 %v2944_v50, 16  ;;  %s2724_s19 = sshll.u32 %s4607_s11, 4  ;;  %s4642_s19 = int_to_ptr.vmem [resolvable:$true] %s2724_s19 }
  0xa9   : > { %v1405_v6 = vshrl.u32 %v4721_v9, 16  ;;  %v3091_v42 = vcombine.low %v2472_v17, %v2475_v29  ;;  %v1384_v7 = vor.u32 %v1383_v62, %v1379_v48  ;;  %v1387_v25 = vshll.u32 %v4722_v33, 16  ;;  %s3577_s27 = scalar_lea.vmem %s4642_s19, 2048  ;;  %p3584_p1 = scmp.lt.s32.totalorder %s4642_s19, %s3582_s29 }
  0xaa   : > { %v2482_v13 = vsel %vm3955_vm7, %v2480_v30, %v2481_v58  ;;  %v2487_v53 = vrot.slane %v2485_v63, 4  ;;  %v2488_v57 = vrot.slane %v4400_v56, 5  ;;  %v2952_v21 = vcombine.low %v1332_v14, %v1342_v1  ;;  %p3578_p12 = scmp.ne.s32.totalorder %s4642_s19, %s3577_s27  ;;  %p3585_p2 = scmp.lt.s32.totalorder %s3583_s30, %s3577_s27 }
  0xab   : > { %3333 = vmatmul.mubr.msk.bf16.gmra.mrb[12].mxu0 %vm461_vm3, %v3062_v61  ;;  %v1401_v61 = vshll.u32 %v4721_v9, 16  ;;  %v3092_v36 = vcombine.low %v2479_v35, %v2482_v13  ;;  %v3085_v31 = vrot.slane %v3077_v27, 9  ;;  %v2495_v26 = vrot.slane %v4421_v28, 5 }
  0xac   : > { %3338 = vmatprep.mubr.msk.bf16.mxu0 %vm461_vm3, %v3088_v0  ;;  %v2492_v0 = vrot.slane %v4720_v8, 5  ;;  %v1394_v55 = vrot.slane %v1392_v34, 4  ;;  %v1397_v19 = vrot.slane %v1395_v2, 5  ;;  %v1407_v38 = vrot.slane %v1405_v6, 4  ;;  %p3579_p13 = pnand %p3578_p12, %p3720_p4  ;;  %p3586_p3 = por %p3585_p2, %p3584_p1 }
  0xad   : > { %3253 = vmatmul.mubr.msk.bf16.gmra.mrb[4].mxu1 %vm461_vm3, %v3571_v22  ;;  %v1374_v22 = vor.u32 %v1373_v54, %v1370_v46  ;;  %v1403_v10 = vrot.slane %v1401_v61, 5  ;;  %v1389_v45 = vrot.slane %v1387_v25, 5  ;;  %v2489_v28 = vsel %vm3955_vm7, %v2487_v53, %v2488_v57 }
  0xae   : > { %3256 = vmatprep.mubr.msk.bf16.mxu1 %vm461_vm3, %v3572_v20  ;;  %v3084_v20 = vrot.slane %v3076_v24, 9  ;;  %v2494_v39 = vrot.slane %v2492_v0, 4  ;;  %v2493_v11 = vsel %vm3955_vm7, %v3085_v31, %v2492_v0  ;;  %v2499_v15 = vrot.slane %v4409_v12, 5  ;;  %p3580_p0 = pneg %p3579_p13 }
  0xaf   : > { %v1375_v44 = vrot.slane %v1374_v22, 4  ;;  %v1398_v40 = vor.u32 %v1397_v19, %v1394_v55  ;;  %v1408_v59 = vor.u32 %v1407_v38, %v1403_v10  ;;  %v3086_v30 = vrot.slane %v3078_v47, 9 }
  0xb0   : > { %v2486_v56 = vsel %vm3955_vm7, %v3084_v20, %v2485_v63  ;;  %v2496_v41 = vsel %vm3955_vm7, %v2494_v39, %v2495_v26  ;;  %v2501_v12 = vrot.slane %v2499_v15, 4  ;;  %v2502_v58 = vrot.slane %v4450_v60, 5  ;;  %p3587_p5 = pnand %p3586_p3, %p3580_p0 }
  0xb1   : > { %v1380_v51 = vsel %vm3800_vm4, %v1375_v44, %v1379_v48  ;;  %v3093_v16 = vcombine.low %v2486_v56, %v2489_v28  ;;  %v3094_v49 = vcombine.low %v2493_v11, %v2496_v41  ;;  %v1399_v46 = vrot.slane %v1398_v40, 4 }
  0xb2   : > { %v1409_v54 = vrot.slane %v1408_v59, 4  ;;  %v2500_v48 = vsel %vm3955_vm7, %v3086_v30, %v2499_v15  ;;  %v2503_v50 = vsel %vm3955_vm7, %v2501_v12, %v2502_v58 }
  0xb3   : > { %3339 = vmatmul.mubr.msk.bf16.vlgmr.msra.gmra.mrb[0].mxu0 %vm461_vm3, %v3089_v43  ;;  %v1385_v43 = vrot.slane %v1384_v7, 4  ;;  %v1404_v60 = vsel %vm3800_vm4, %v1399_v46, %v1403_v10  ;;  %v3095_v29 = vcombine.low %v2500_v48, %v2503_v50 }
  0xb4   : > { %3342 = vmatprep.mubr.msk.bf16.mxu0 %vm461_vm3, %v3090_v18  ;;  %v4723_v18 = vld [vmem:[#allocation7_spill] sm:$0xff] }
  0xb5   : > { %3257 = vmatmul.mubr.msk.bf16.gmra.mrb[8].mxu1 %vm461_vm3, %v3573_v37  ;;  %v1411_v4 = vshll.u32 %v4723_v18, 16  ;;  %v1390_v37 = vsel %vm3800_vm4, %v1385_v43, %v1389_v45 }
  0xb6   : > { %3260 = vmatprep.mubr.msk.bf16.mxu1 %vm461_vm3, %v3574_v23  ;;  %v2954_v23 = vcombine.low %v1380_v51, %v1390_v37 }
  0xb7   : > { %v1413_v62 = vrot.slane %v1411_v4, 5 }
  0xb9   : > { %v1414_v17 = vsel %vm3800_vm4, %v1409_v54, %v1413_v62 }
  0xbb   : > { %3343 = vmatmul.mubr.msk.bf16.gmra.mrb[4].mxu0 %vm461_vm3, %v3091_v42 }
  0xbc   : > { %3346 = vmatprep.mubr.msk.bf16.mxu0 %vm461_vm3, %v3092_v36 }
  0xbd   : > { %3261 = vmatmul.mubr.msk.bf16.gmra.mrb[12].mxu1 %vm461_vm3, %v3575_v52 }
  0xbe   : > { %3274 = vmatprep.mubr.msk.bf16.mxu1 %vm461_vm3, %v2952_v21 }
  0xc3   : > { %3347 = vmatmul.mubr.msk.bf16.gmra.mrb[8].mxu0 %vm461_vm3, %v3093_v16 }
  0xc4   : > { %3350 = vmatprep.mubr.msk.bf16.mxu0 %vm461_vm3, %v3094_v49 }
  0xc5   : > { %3275 = vmatmul.mubr.msk.bf16.vlgmr.msra.gmra.mrb[8].mxu1 %vm461_vm3, %v4503_v3  ;;  %v2955_v3 = vcombine.low %v1404_v60, %v1414_v17 }
  0xc6   : > { %3278 = vmatprep.mubr.msk.bf16.mxu1 %vm461_vm3, %v2954_v23 }
  0xcb   : > { %3351 = vmatmul.mubr.msk.bf16.gmra.mrb[12].mxu0 %vm461_vm3, %v3095_v29 }
  0xcd   : > { %3279 = vmatmul.mubr.msk.bf16.gmra.mrb[12].mxu1 %vm461_vm3, %v2955_v3 }
 0x178   : > { %v3250_v35 = vpop.f32.mrb[0].mxu1 }
 0x179   : > { %v1120_v63 = vpop.f32.mrb[1].mxu1 }
 0x17a   : > { %v3251_v5 = vpop.f32.mrb[2].mxu1 }
 0x17b   : > { %v1123_v14 = vpop.f32.mrb[3].mxu1 }
 0x180   : > { %v3254_v1 = vpop.f32.mrb[4].mxu1 }
 0x181   : > { %v1136_v13 = vpop.f32.mrb[5].mxu1 }
 0x182   : > { %v3255_v24 = vpop.f32.mrb[6].mxu1 }
 0x183   : > { %v1139_v8 = vpop.f32.mrb[7].mxu1 }
 0x186   : > { %v3340_v0 = vpop.f32.mrb[0].mxu0 }
 0x187   : > { %v3356_v27 = vadd.f32 %v3340_v0, %v3250_v35  ;;  %v2591_v34 = vpop.f32.mrb[1].mxu0 }
 0x188   : > { %v3357_v2 = vadd.f32 %v2591_v34, %v1120_v63  ;;  %v3341_v9 = vpop.f32.mrb[2].mxu0 }
 0x189   : > { %v2679_v61 = vadd.f32 %v3356_v27, %v4603_v32  ;;  %v3358_v6 = vadd.f32 %v3341_v9, %v3251_v5  ;;  %v2594_v42 = vpop.f32.mrb[3].mxu0 }
 0x18a   : > { %v2677_v22 = vadd.f32 %v3357_v2, %v4603_v32  ;;  %v3359_v7 = vadd.f32 %v2594_v42, %v1123_v14 }
 0x18b   : > { %2695 = vst [vmem:[%s4607_s11 + $0x10] sm:$0xff] %v2679_v61  ;;  %v2680_v33 = vadd.f32 %v3358_v6, %v4603_v32 }
 0x18c   : > { %2693 = vst [vmem:[%s4607_s11] sm:$0xff] %v2677_v22  ;;  %v2678_v25 = vadd.f32 %v3359_v7, %v4603_v32 }
 0x18d   : > { %2696 = vst [vmem:[%s4607_s11 + $0x18] sm:$0xff] %v2680_v33 }
 0x18e   : > { %2694 = vst [vmem:[%s4607_s11 + $0x8] sm:$0xff] %v2678_v25  ;;  %v3344_v36 = vpop.f32.mrb[4].mxu0 }
 0x18f   : > { %v3360_v20 = vadd.f32 %v3344_v36, %v3254_v1  ;;  %v2607_v53 = vpop.f32.mrb[5].mxu0 }
 0x190   : > { %v3361_v57 = vadd.f32 %v2607_v53, %v1136_v13  ;;  %v3345_v52 = vpop.f32.mrb[6].mxu0 }
 0x191   : > { %v2683_v21 = vadd.f32 %v3360_v20, %v4603_v32  ;;  %v3362_v31 = vadd.f32 %v3345_v52, %v3255_v24  ;;  %v2610_v39 = vpop.f32.mrb[7].mxu0 }
 0x192   : > { %v2681_v26 = vadd.f32 %v3361_v57, %v4603_v32  ;;  %v3363_v55 = vadd.f32 %v2610_v39, %v1139_v8 }
 0x193   : > { %2699 = vst [vmem:[%s4607_s11 + $0x30] sm:$0xff] %v2683_v21  ;;  %v2684_v19 = vadd.f32 %v3362_v31, %v4603_v32 }
 0x194   : > { %2697 = vst [vmem:[%s4607_s11 + $0x20] sm:$0xff] %v2681_v26  ;;  %v2682_v10 = vadd.f32 %v3363_v55, %v4603_v32 }
 0x195   : > { %2700 = vst [vmem:[%s4607_s11 + $0x38] sm:$0xff] %v2684_v19 }
 0x196   : > { %2698 = vst [vmem:[%s4607_s11 + $0x28] sm:$0xff] %v2682_v10  ;;  %v3348_v38 = vpop.f32.mrb[8].mxu0 }
 0x197   : > { %v2623_v43 = vpop.f32.mrb[9].mxu0 }
 0x198   : > { %v3276_v44 = vpop.f32.mrb[8].mxu1  ;;  %v3349_v28 = vpop.f32.mrb[10].mxu0 }
 0x199   : > { %v3364_v45 = vadd.f32 %v3348_v38, %v3276_v44  ;;  %v1534_v56 = vpop.f32.mrb[9].mxu1  ;;  %v2626_v41 = vpop.f32.mrb[11].mxu0 }
 0x19a   : > { %v3365_v11 = vadd.f32 %v2623_v43, %v1534_v56  ;;  %v3277_v15 = vpop.f32.mrb[10].mxu1 }
 0x19b   : > { %v2687_v40 = vadd.f32 %v3364_v45, %v4603_v32  ;;  %v3366_v59 = vadd.f32 %v3349_v28, %v3277_v15  ;;  %v1537_v18 = vpop.f32.mrb[11].mxu1 }
 0x19c   : > { %v2685_v4 = vadd.f32 %v3365_v11, %v4603_v32  ;;  %v3367_v47 = vadd.f32 %v2626_v41, %v1537_v18 }
 0x19d   : > { %2703 = vst [vmem:[%s4607_s11 + $0x50] sm:$0xff] %v2687_v40  ;;  %v2688_v51 = vadd.f32 %v3366_v59, %v4603_v32 }
 0x19e   : > { %2701 = vst [vmem:[%s4607_s11 + $0x40] sm:$0xff] %v2685_v4  ;;  %v2686_v37 = vadd.f32 %v3367_v47, %v4603_v32  ;;  %v3352_v16 = vpop.f32.mrb[12].mxu0 }
 0x19f   : > { %2704 = vst [vmem:[%s4607_s11 + $0x58] sm:$0xff] %v2688_v51  ;;  %v2639_v30 = vpop.f32.mrb[13].mxu0 }
 0x1a0   : > { %2702 = vst [vmem:[%s4607_s11 + $0x48] sm:$0xff] %v2686_v37  ;;  %v3280_v49 = vpop.f32.mrb[12].mxu1  ;;  %v3353_v23 = vpop.f32.mrb[14].mxu0 }
 0x1a1   : > { %v3368_v12 = vadd.f32 %v3352_v16, %v3280_v49  ;;  %v1550_v58 = vpop.f32.mrb[13].mxu1  ;;  %v2642_v62 = vpop.f32.mrb[15].mxu0 }
 0x1a2   : > { %v3369_v46 = vadd.f32 %v2639_v30, %v1550_v58  ;;  %v3281_v54 = vpop.f32.mrb[14].mxu1 }
 0x1a3   : > { %v2691_v48 = vadd.f32 %v3368_v12, %v4603_v32  ;;  %v3370_v50 = vadd.f32 %v3353_v23, %v3281_v54  ;;  %v1553_v60 = vpop.f32.mrb[15].mxu1 }
 0x1a4   : > { %v2689_v17 = vadd.f32 %v3369_v46, %v4603_v32  ;;  %v3371_v29 = vadd.f32 %v2642_v62, %v1553_v60 }
 0x1a5   : > { %2707 = vst [vmem:[%s4607_s11 + $0x70] sm:$0xff] %v2691_v48  ;;  %v2692_v3 = vadd.f32 %v3370_v50, %v4603_v32 }
 0x1a6   : > { %2705 = vst [vmem:[%s4607_s11 + $0x60] sm:$0xff] %v2689_v17  ;;  %v2690_v35 = vadd.f32 %v3371_v29, %v4603_v32 }
 0x1a7   : > { %2708 = vst [vmem:[%s4607_s11 + $0x78] sm:$0xff] %v2692_v3 }
 0x1a8   : > { %2706 = vst [vmem:[%s4607_s11 + $0x68] sm:$0xff] %v2690_v35 }
 0x1a9   : > { %3590 = shalt.err (!%p3587_p5)
}
 0x1aa   : > { %s3591_s4 = scalar_lea.hbm %s4640_s26, 2048  ;;  %s3595_s7 = scalar_lea.hbm %s4699_s3, 8192 }
 0x1ab   : > { %p3592_p6 = scmp.ne.s32.totalorder %s4640_s26, %s3591_s4  ;;  %p3596_p10 = scmp.lt.u32.totalorder %s4640_s26, %s4699_s3 }
 0x1ac   : > { %p3597_p11 = scmp.lt.u32.totalorder %s3595_s7, %s3591_s4  ;;  %p3599_p13 = scmp.lt.u32.totalorder %s3591_s4, %s4640_s26 }
 0x1ad   : > { %p3593_p7 = pnand %p3592_p6, %p3720_p4 }
 0x1ae   : > { %p3598_p12 = por %p3597_p11, %p3596_p10 }
 0x1af   : > { %p3594_p9 = pneg %p3593_p7 }
 0x1b0   : > { %p3600_p0 = por %p3599_p13, %p3598_p12 }
 0x1b2   : > { %p3601_p1 = pnand %p3600_p0, %p3594_p9 }
 0x1b4   : > { %3604 = shalt.err (!%p3601_p1)
}
 0x1b5   : > { %s3658_s10 = smov 128   ;;  %s3659_s11 = smov 8  }
 0x1b6   : > { %3495 = dma.vmem_to_hbm [thread:$0]  (%p3720_p4), %s4642_s19, 2048, %s4640_s26, %s4650_s15, %s3658_s10, %s3658_s10, %s3659_s11  }
 0x1b7 PF: > { %p3501_p2 = scmp.ge.s32.totalorder %s3655_s17, 2  ;;  %s2739_s18 = sand.u32 1, %s3635_s12  }
 0x1b8   : > { %s2740_s21 = scalar_lea.sflag [#allocation3], %s2739_s18 }
 0x1b9   : > { %p3498_p3 = pnand %p3501_p2, %p3727_p8 }
 0x1bb   : > { %3630 = dma.done.wait (!%p3498_p3), %s2740_s21, 2048  }
 0x1bc   : > { %3632 = vsyncadd (!%p3498_p3), %s2740_s21, 4294965248  ;;  %s16_s17 = sadd.s32 1, %s3655_s17   ;;  %s4724_s12 = smov %s3639_s13 }
 0x1bd   : > { %p13_p5 = scmp.ge.s32.totalorder %s16_s17, 6   ;;  %s4725_s13 = smov %s3643_s14 }
 0x1be   : > { %s4726_s14 = smov %s3733_s25  ;;  %s4727_s15 = smov %s3651_s16 }
 0x1bf   : > { %s4728_s16 = smov %s4730_s20  ;;  %15 = sbr.rel (!%p13_p5) target bundleno = 4 (0x4), region = 83 }
 0x1c6   :  { %2745 = vsyncpa [#allocation3], 1 }
 0x1c7   :  { %2747 = vsyncpa [#allocation3 + $0x1], 1 }

</bundles_post_ra>
